<compile_context>
chip_gen: v5e
topology: v5e:2x2
jax: 0.10.0
libtpu: 0.0.40
codegen_flags: <defaults>
</compile_context>

<pallas_src>
import functools

import jax
import jax.numpy as jnp
from jax.experimental import pallas as pl
from jax.experimental.pallas import tpu as pltpu


# --------------------------------------------------------------------------- #
# Kernels
# --------------------------------------------------------------------------- #
def linear_kernel(x_ref, w_ref, b_ref, o_ref, *, relu):
    """o = (x @ W + b), optional ReLU.  Row-block tiled."""
    y = jnp.dot(x_ref[...], w_ref[...], preferred_element_type=jnp.float32)
    y = y + b_ref[...]
    if relu:
        y = jnp.maximum(y, 0.0)
    o_ref[...] = y


def agg_kernel(a_ref, xw_ref, b_ref, o_ref, acc_ref, *, relu):
    """Row/K tiled:  out[i] = sum_k A[i,k] @ XW[k]  (+ b, optional ReLU)."""
    @pl.when(pl.program_id(1) == 0)
    def _():
        acc_ref[...] = jnp.zeros_like(acc_ref)

    acc_ref[...] += jnp.dot(a_ref[...], xw_ref[...],
                            preferred_element_type=jnp.float32)

    @pl.when(pl.program_id(1) == pl.num_programs(1) - 1)
    def _():
        y = acc_ref[...] + b_ref[...]
        if relu:
            y = jnp.maximum(y, 0.0)
        o_ref[...] = y


def gru_kernel(x_ref, h_ref, wih_ref, whh_ref, bih_ref, bhh_ref, o_ref):
    """Fused GRUCell, PyTorch gate order (r, z, n), packed (H, 3H) weights."""
    x = x_ref[...]
    h = h_ref[...]
    hp = h.shape[-1]
    gi = jnp.dot(x, wih_ref[...], preferred_element_type=jnp.float32) + bih_ref[...]
    gh = jnp.dot(h, whh_ref[...], preferred_element_type=jnp.float32) + bhh_ref[...]
    r = jax.nn.sigmoid(gi[:, :hp] + gh[:, :hp])
    z = jax.nn.sigmoid(gi[:, hp:2 * hp] + gh[:, hp:2 * hp])
    n = jnp.tanh(gi[:, 2 * hp:] + r * gh[:, 2 * hp:])
    o_ref[...] = (1.0 - z) * n + z * h


def decoder_kernel(sd_ref, w1_ref, b1_ref, w2_ref, b2_ref, o_ref):
    """2-layer MLP over concat([src, dst]) endpoint embeddings."""
    hdec = jnp.maximum(
        jnp.dot(sd_ref[...], w1_ref[...], preferred_element_type=jnp.float32)
        + b1_ref[...], 0.0)
    o_ref[...] = (jnp.dot(hdec, w2_ref[...], preferred_element_type=jnp.float32)
                  + b2_ref[...])


# --------------------------------------------------------------------------- #
# pallas_call wrappers
# --------------------------------------------------------------------------- #
def _linear(x, w, b, *, relu, tm):
    n, k = x.shape
    h = w.shape[1]
    return pl.pallas_call(
        functools.partial(linear_kernel, relu=relu),
        out_shape=jax.ShapeDtypeStruct((n, h), jnp.float32),
        grid=(n // tm,),
        in_specs=[pl.BlockSpec((tm, k), lambda i: (i, 0)),
                  pl.BlockSpec((k, h), lambda i: (0, 0)),
                  pl.BlockSpec((1, h), lambda i: (0, 0))],
        out_specs=pl.BlockSpec((tm, h), lambda i: (i, 0)),
        compiler_params=pltpu.CompilerParams(dimension_semantics=("parallel",)),
    )(x, w, b)


def _aggregate(a, xw, b, *, relu, tm, tk):
    n = a.shape[0]
    h = xw.shape[1]
    return pl.pallas_call(
        functools.partial(agg_kernel, relu=relu),
        out_shape=jax.ShapeDtypeStruct((n, h), jnp.float32),
        grid=(n // tm, n // tk),
        in_specs=[pl.BlockSpec((tm, tk), lambda i, k: (i, k)),
                  pl.BlockSpec((tk, h), lambda i, k: (k, 0)),
                  pl.BlockSpec((1, h), lambda i, k: (0, 0))],
        out_specs=pl.BlockSpec((tm, h), lambda i, k: (i, 0)),
        scratch_shapes=[pltpu.VMEM((tm, h), jnp.float32)],
        compiler_params=pltpu.CompilerParams(
            dimension_semantics=("parallel", "arbitrary")),
    )(a, xw, b)


def _gru(x, h, wih, whh, bih, bhh, *, tm):
    n, hp = x.shape
    return pl.pallas_call(
        gru_kernel,
        out_shape=jax.ShapeDtypeStruct((n, hp), jnp.float32),
        grid=(n // tm,),
        in_specs=[pl.BlockSpec((tm, hp), lambda i: (i, 0)),
                  pl.BlockSpec((tm, hp), lambda i: (i, 0)),
                  pl.BlockSpec((hp, 3 * hp), lambda i: (0, 0)),
                  pl.BlockSpec((hp, 3 * hp), lambda i: (0, 0)),
                  pl.BlockSpec((1, 3 * hp), lambda i: (0, 0)),
                  pl.BlockSpec((1, 3 * hp), lambda i: (0, 0))],
        out_specs=pl.BlockSpec((tm, hp), lambda i: (i, 0)),
        input_output_aliases={1: 0},   # previous_state buffer reused for new state
        compiler_params=pltpu.CompilerParams(dimension_semantics=("parallel",)),
    )(x, h, wih, whh, bih, bhh)


def _decoder(sd, w1, b1, w2, b2, *, te):
    e, k2 = sd.shape
    hp = w1.shape[1]
    dp = w2.shape[1]
    return pl.pallas_call(
        decoder_kernel,
        out_shape=jax.ShapeDtypeStruct((e, dp), jnp.float32),
        grid=(e // te,),
        in_specs=[pl.BlockSpec((te, k2), lambda i: (i, 0)),
                  pl.BlockSpec((k2, hp), lambda i: (0, 0)),
                  pl.BlockSpec((1, hp), lambda i: (0, 0)),
                  pl.BlockSpec((hp, dp), lambda i: (0, 0)),
                  pl.BlockSpec((1, dp), lambda i: (0, 0))],
        out_specs=pl.BlockSpec((te, dp), lambda i: (i, 0)),
        compiler_params=pltpu.CompilerParams(dimension_semantics=("parallel",)),
    )(sd, w1, b1, w2, b2)


# --------------------------------------------------------------------------- #
# Glue: padding helpers, normalized adjacency, forward
# --------------------------------------------------------------------------- #
def _round_up(x, m):
    return ((x + m - 1) // m) * m


def _pad2(a, rows, cols):
    return jnp.pad(a, ((0, rows - a.shape[0]), (0, cols - a.shape[1])))


def _pad_gru_w(w, hidden, hp):
    # (hidden, 3*hidden) packed [r|z|n] -> per-gate zero-pad -> (hp, 3*hp)
    w3 = w.reshape(hidden, 3, hidden)
    w3 = jnp.pad(w3, ((0, hp - hidden), (0, 0), (0, hp - hidden)))
    return w3.reshape(hp, 3 * hp)


def _pad_gru_b(b, hidden, hp):
    b3 = b.reshape(1, 3, hidden)
    b3 = jnp.pad(b3, ((0, 0), (0, 0), (0, hp - hidden)))
    return b3.reshape(1, 3 * hp)


def _pad_dec_w1(w, hidden, hp):
    # (2*hidden, hidden) stacked [src; dst] -> per-part zero-pad -> (2*hp, hp)
    w2 = w.reshape(2, hidden, hidden)
    w2 = jnp.pad(w2, ((0, 0), (0, hp - hidden), (0, hp - hidden)))
    return w2.reshape(2 * hp, hp)


def build_norm_adj(edge_index, n):
    """Dense D^{-1/2}(A + I_remaining)D^{-1/2} matching PyG gcn_norm
    (add_remaining_self_loops: existing self-loops keep weight 1)."""
    src, dst = edge_index[0], edge_index[1]
    a = jnp.zeros((n, n), jnp.float32).at[dst, src].add(1.0)
    diag = jnp.diagonal(a)
    a = a + jnp.diag(jnp.where(diag > 0, 0.0, 1.0))
    deg = a.sum(axis=1)
    dinv = jnp.where(deg > 0, 1.0 / jnp.sqrt(deg), 0.0)
    return dinv[:, None] * a * dinv[None, :]


@jax.jit
def dygcn_forward(x, edge_index, edge_label_index, previous_state, params):
    n, dim_in = x.shape
    hidden = previous_state.shape[1]
    n_layers = params["wgcn"].shape[0]
    dim_out = params["wd2"].shape[1]
    e_lbl = edge_label_index.shape[1]

    # lane-dense padded dims
    hp = _round_up(hidden, 128)
    kp = _round_up(dim_in, 128)
    dp = _round_up(dim_out, 128)
    tm = min(256, _round_up(n, 8))
    np_ = _round_up(n, tm)
    te = min(256, _round_up(e_lbl, 8))
    ep = _round_up(e_lbl, te)

    # dense normalized adjacency (TODO(synk): sparse CSR SpMM for real graphs)
    a_pad = _pad2(build_norm_adj(edge_index, n), np_, np_)

    x_pad = _pad2(x, np_, kp)
    h_pad = _pad2(previous_state, np_, hp)

    wmlp = _pad2(params["wmlp"], kp, hp)
    bmlp = _pad2(params["bmlp"], 1, hp)
    wgcn = [_pad2(params["wgcn"][l], hp, hp) for l in range(n_layers)]
    bgcn = [_pad2(params["bgcn"][l], 1, hp) for l in range(n_layers)]
    zero_b = jnp.zeros((1, hp), jnp.float32)

    wih = _pad_gru_w(params["wih"], hidden, hp)
    whh = _pad_gru_w(params["whh"], hidden, hp)
    bih = _pad_gru_b(params["bih"], hidden, hp)
    bhh = _pad_gru_b(params["bhh"], hidden, hp)

    wd1 = _pad_dec_w1(params["wd1"], hidden, hp)
    bd1 = _pad2(params["bd1"], 1, hp)
    wd2 = _pad2(params["wd2"], hp, dp)
    bd2 = _pad2(params["bd2"], 1, dp)

    # 1) mlp_transform: ReLU(Linear(x))
    xh = _linear(x_pad, wmlp, bmlp, relu=True, tm=tm)

    # 2) GCN layers: x = A_hat @ (x @ W) + b, ReLU between (not after last)
    for l in range(n_layers):
        xw = _linear(xh, wgcn[l], zero_b, relu=False, tm=tm)
        xh = _aggregate(a_pad, xw, bgcn[l], relu=(l != n_layers - 1),
                        tm=tm, tk=tm)

    # 3) GRUCell(x, previous_state)
    xnew = _gru(xh, h_pad, wih, whh, bih, bhh, tm=tm)

    # 4) LinkDecoder: endpoint gather (plain XLA gather = pure data movement)
    src = jnp.take(xnew, edge_label_index[0], axis=0)
    dst = jnp.take(xnew, edge_label_index[1], axis=0)
    sd = jnp.concatenate([src, dst], axis=1)
    sd = jnp.pad(sd, ((0, ep - e_lbl), (0, 0)))
    pred = _decoder(sd, wd1, bd1, wd2, bd2, te=te)

    return pred[:e_lbl, :dim_out], xnew[:n, :hidden]


# --------------------------------------------------------------------------- #
# Parameters & pure-JAX reference
# --------------------------------------------------------------------------- #
def init_params(key, dim_in, hidden, dim_out, n_layers):
    ks = jax.random.split(key, 12)
    s = 0.1
    nrm = lambda k, shp: s * jax.random.normal(k, shp, jnp.float32)
    return {
        "wmlp": nrm(ks[0], (dim_in, hidden)),
        "bmlp": nrm(ks[1], (1, hidden)),
        "wgcn": nrm(ks[2], (n_layers, hidden, hidden)),
        "bgcn": nrm(ks[3], (n_layers, 1, hidden)),
        "wih":  nrm(ks[4], (hidden, 3 * hidden)),     # packed [r|z|n]
        "whh":  nrm(ks[5], (hidden, 3 * hidden)),
        "bih":  nrm(ks[6], (1, 3 * hidden)),
        "bhh":  nrm(ks[7], (1, 3 * hidden)),
        "wd1":  nrm(ks[8], (2 * hidden, hidden)),     # stacked [src; dst]
        "bd1":  nrm(ks[9], (1, hidden)),
        "wd2":  nrm(ks[10], (hidden, dim_out)),
        "bd2":  jnp.zeros((1, dim_out), jnp.float32),
    }


def dygcn_reference(x, edge_index, edge_label_index, previous_state, params):
    n = x.shape[0]
    hidden = previous_state.shape[1]
    n_layers = params["wgcn"].shape[0]
    a = build_norm_adj(edge_index, n)
    h = jnp.maximum(x @ params["wmlp"] + params["bmlp"], 0.0)
    for l in range(n_layers):
        h = a @ (h @ params["wgcn"][l]) + params["bgcn"][l]
        if l != n_layers - 1:
            h = jnp.maximum(h, 0.0)
    gi = h @ params["wih"] + params["bih"]
    gh = previous_state @ params["whh"] + params["bhh"]
    r = jax.nn.sigmoid(gi[:, :hidden] + gh[:, :hidden])
    z = jax.nn.sigmoid(gi[:, hidden:2 * hidden] + gh[:, hidden:2 * hidden])
    ng = jnp.tanh(gi[:, 2 * hidden:] + r * gh[:, 2 * hidden:])
    xnew = (1.0 - z) * ng + z * previous_state
    src = xnew[edge_label_index[0]]
    dst = xnew[edge_label_index[1]]
    hd = jnp.maximum(jnp.concatenate([src, dst], 1) @ params["wd1"]
                     + params["bd1"], 0.0)
    pred = hd @ params["wd2"] + params["bd2"]
    return pred, xnew


# --------------------------------------------------------------------------- #
if __name__ == "__main__":
    # Small deterministic problem: 16 nodes, dim_in=8, hidden=32, dim_out=2,
    # 2 GCN layers, 24 edges, 8 label edges, window_size=1, recurrent=True.
    N, DIM_IN, HIDDEN, DIM_OUT, N_LAYERS, E, E_LBL = 16, 8, 32, 2, 2, 24, 8

    key = jax.random.PRNGKey(0)
    k_x, k_e, k_l, k_h, k_p = jax.random.split(key, 5)

    x = jax.random.normal(k_x, (N, DIM_IN), jnp.float32)
    edge_index = jax.random.randint(k_e, (2, E), 0, N, jnp.int32)
    edge_label_index = jax.random.randint(k_l, (2, E_LBL), 0, N, jnp.int32)
    previous_state = jax.random.normal(k_h, (N, HIDDEN), jnp.float32)
    params = init_params(k_p, DIM_IN, HIDDEN, DIM_OUT, N_LAYERS)

    prediction, x_out = dygcn_forward(x, edge_index, edge_label_index,
                                      previous_state, params)
    jax.block_until_ready((prediction, x_out))
    assert prediction.shape == (E_LBL, DIM_OUT) and x_out.shape == (N, HIDDEN)

    pred_ref, x_ref = dygcn_reference(x, edge_index, edge_label_index,
                                      previous_state, params)
    assert jnp.allclose(prediction, pred_ref, atol=2e-2, rtol=2e-2)
    assert jnp.allclose(x_out, x_ref, atol=2e-2, rtol=2e-2)

    print("KERNEL_OK")
</pallas_src>

<mosaic_0001>
module attributes {stable_mosaic.version = 11 : i64} {
  func.func @linear_kernel(%arg0: i32, %arg1: memref<16x128xf32, #tpu.memory_space<vmem>>, %arg2: memref<128x128xf32, #tpu.memory_space<vmem>>, %arg3: memref<1x128xf32, #tpu.memory_space<vmem>>, %arg4: memref<16x128xf32, #tpu.memory_space<vmem>>) attributes {dimension_semantics = [#tpu.dimension_semantics<parallel>], iteration_bounds = array<i64: 1>, scalar_prefetch = 0 : i64, scratch_operands = 0 : i64, tpu.core_type = #tpu.core_type<tc>, window_params = [{transform_indices = @transform_0, window_bounds = array<i64: 16, 128>}, {pipeline_mode = #tpu.pipeline_mode<synchronous>, transform_indices = @transform_1, window_bounds = array<i64: 128, 128>}, {pipeline_mode = #tpu.pipeline_mode<synchronous>, transform_indices = @transform_2, window_bounds = array<i64: 1, 128>}, {transform_indices = @transform_3, window_bounds = array<i64: 16, 128>}]} {
    %c0 = arith.constant 0 : index
    %c0_0 = arith.constant 0 : index
    %0 = vector.load %arg1[%c0, %c0_0] : memref<16x128xf32, #tpu.memory_space<vmem>>, vector<16x128xf32>
    %c0_1 = arith.constant 0 : index
    %c0_2 = arith.constant 0 : index
    %1 = vector.load %arg2[%c0_1, %c0_2] : memref<128x128xf32, #tpu.memory_space<vmem>>, vector<128x128xf32>
    %cst = arith.constant dense<0.000000e+00> : vector<16x128xf32>
    %2 = tpu.matmul %0, %1, %cst {dimension_numbers = #tpu.dot_dimension_numbers<[1], [0], [0], [1], [0, 0, 1, 1], [], []>} : vector<16x128xf32>, vector<128x128xf32>, vector<16x128xf32> -> vector<16x128xf32>
    %c0_3 = arith.constant 0 : index
    %c0_4 = arith.constant 0 : index
    %3 = vector.load %arg3[%c0_3, %c0_4] : memref<1x128xf32, #tpu.memory_space<vmem>>, vector<1x128xf32>
    %4 = vector.broadcast %3 : vector<1x128xf32> to vector<16x128xf32>
    %5 = arith.addf %2, %4 : vector<16x128xf32>
    %c0_5 = arith.constant 0 : index
    %c0_6 = arith.constant 0 : index
    %6 = vector.load %arg4[%c0_5, %c0_6] : memref<16x128xf32, #tpu.memory_space<vmem>>, vector<16x128xf32>
    tpu.vector_store %arg4[%c0_5, %c0_6], %5 {strides = array<i32>} : memref<16x128xf32, #tpu.memory_space<vmem>>, vector<16x128xf32>,
    return
  }
  func.func @transform_0(%arg0: i32) -> (i32, i32) {
    %c0_i32 = arith.constant 0 : i32
    %c0_i32_0 = arith.constant 0 : i32
    return %arg0, %c0_i32 : i32, i32
  }
  func.func @transform_1(%arg0: i32) -> (i32, i32) {
    %c0_i32 = arith.constant 0 : i32
    %c0_i32_0 = arith.constant 0 : i32
    %c0_i32_1 = arith.constant 0 : i32
    return %c0_i32, %c0_i32_0 : i32, i32
  }
  func.func @transform_2(%arg0: i32) -> (i32, i32) {
    %c0_i32 = arith.constant 0 : i32
    %c0_i32_0 = arith.constant 0 : i32
    %c0_i32_1 = arith.constant 0 : i32
    return %c0_i32, %c0_i32_0 : i32, i32
  }
  func.func @transform_3(%arg0: i32) -> (i32, i32) {
    %c0_i32 = arith.constant 0 : i32
    %c0_i32_0 = arith.constant 0 : i32
    return %arg0, %c0_i32 : i32, i32
  }
}

module attributes {stable_mosaic.version = 11 : i64} {
  func.func @linear_kernel(%arg0: i32, %arg1: memref<16x128xf32, #tpu.memory_space<vmem>>, %arg2: memref<128x128xf32, #tpu.memory_space<vmem>>, %arg3: memref<1x128xf32, #tpu.memory_space<vmem>>, %arg4: memref<16x128xf32, #tpu.memory_space<vmem>>) attributes {dimension_semantics = [#tpu.dimension_semantics<parallel>], iteration_bounds = array<i64: 1>, scalar_prefetch = 0 : i64, scratch_operands = 0 : i64, tpu.core_type = #tpu.core_type<tc>, window_params = [{transform_indices = @transform_0, window_bounds = array<i64: 16, 128>}, {pipeline_mode = #tpu.pipeline_mode<synchronous>, transform_indices = @transform_1, window_bounds = array<i64: 128, 128>}, {pipeline_mode = #tpu.pipeline_mode<synchronous>, transform_indices = @transform_2, window_bounds = array<i64: 1, 128>}, {transform_indices = @transform_3, window_bounds = array<i64: 16, 128>}]} {
    %c0 = arith.constant 0 : index
    %c0_0 = arith.constant 0 : index
    %0 = vector.load %arg1[%c0, %c0_0] : memref<16x128xf32, #tpu.memory_space<vmem>>, vector<16x128xf32>
    %c0_1 = arith.constant 0 : index
    %c0_2 = arith.constant 0 : index
    %1 = vector.load %arg2[%c0_1, %c0_2] : memref<128x128xf32, #tpu.memory_space<vmem>>, vector<128x128xf32>
    %cst = arith.constant dense<0.000000e+00> : vector<16x128xf32>
    %2 = tpu.matmul %0, %1, %cst {dimension_numbers = #tpu.dot_dimension_numbers<[1], [0], [0], [1], [0, 0, 1, 1], [], []>} : vector<16x128xf32>, vector<128x128xf32>, vector<16x128xf32> -> vector<16x128xf32>
    %c0_3 = arith.constant 0 : index
    %c0_4 = arith.constant 0 : index
    %3 = vector.load %arg3[%c0_3, %c0_4] : memref<1x128xf32, #tpu.memory_space<vmem>>, vector<1x128xf32>
    %4 = vector.broadcast %3 : vector<1x128xf32> to vector<16x128xf32>
    %5 = arith.addf %2, %4 : vector<16x128xf32>
    %cst_5 = arith.constant 0.000000e+00 : f32
    %6 = vector.broadcast %cst_5 : f32 to vector<16x128xf32>
    %7 = arith.maximumf %5, %6 : vector<16x128xf32>
    %c0_6 = arith.constant 0 : index
    %c0_7 = arith.constant 0 : index
    %8 = vector.load %arg4[%c0_6, %c0_7] : memref<16x128xf32, #tpu.memory_space<vmem>>, vector<16x128xf32>
    tpu.vector_store %arg4[%c0_6, %c0_7], %7 {strides = array<i32>} : memref<16x128xf32, #tpu.memory_space<vmem>>, vector<16x128xf32>,
    return
  }
  func.func @transform_0(%arg0: i32) -> (i32, i32) {
    %c0_i32 = arith.constant 0 : i32
    %c0_i32_0 = arith.constant 0 : i32
    return %arg0, %c0_i32 : i32, i32
  }
  func.func @transform_1(%arg0: i32) -> (i32, i32) {
    %c0_i32 = arith.constant 0 : i32
    %c0_i32_0 = arith.constant 0 : i32
    %c0_i32_1 = arith.constant 0 : i32
    return %c0_i32, %c0_i32_0 : i32, i32
  }
  func.func @transform_2(%arg0: i32) -> (i32, i32) {
    %c0_i32 = arith.constant 0 : i32
    %c0_i32_0 = arith.constant 0 : i32
    %c0_i32_1 = arith.constant 0 : i32
    return %c0_i32, %c0_i32_0 : i32, i32
  }
  func.func @transform_3(%arg0: i32) -> (i32, i32) {
    %c0_i32 = arith.constant 0 : i32
    %c0_i32_0 = arith.constant 0 : i32
    return %arg0, %c0_i32 : i32, i32
  }
}

module attributes {stable_mosaic.version = 11 : i64} {
  func.func @agg_kernel(%arg0: i32, %arg1: i32, %arg2: memref<16x16xf32, #tpu.memory_space<vmem>>, %arg3: memref<16x128xf32, #tpu.memory_space<vmem>>, %arg4: memref<1x128xf32, #tpu.memory_space<vmem>>, %arg5: memref<16x128xf32, #tpu.memory_space<vmem>>, %arg6: memref<16x128xf32, #tpu.memory_space<vmem>>) attributes {dimension_semantics = [#tpu.dimension_semantics<parallel>, #tpu.dimension_semantics<arbitrary>], iteration_bounds = array<i64: 1, 1>, scalar_prefetch = 0 : i64, scratch_operands = 1 : i64, tpu.core_type = #tpu.core_type<tc>, window_params = [{transform_indices = @transform_0, window_bounds = array<i64: 16, 16>}, {transform_indices = @transform_1, window_bounds = array<i64: 16, 128>}, {pipeline_mode = #tpu.pipeline_mode<synchronous>, transform_indices = @transform_2, window_bounds = array<i64: 1, 128>}, {transform_indices = @transform_3, window_bounds = array<i64: 16, 128>}]} {
    %c0_i32 = arith.constant 0 : i32
    %0 = arith.cmpi eq, %arg1, %c0_i32 : i32
    %1 = arith.extui %0 : i1 to i32
    %c0_i32_0 = arith.constant 0 : i32
    %2 = arith.cmpi ne, %1, %c0_i32_0 : i32
    scf.if %2 {
      %cst_10 = arith.constant 0.000000e+00 : f32
      %12 = vector.broadcast %cst_10 : f32 to vector<16x128xf32>
      %c0_11 = arith.constant 0 : index
      %c0_12 = arith.constant 0 : index
      %13 = vector.load %arg6[%c0_11, %c0_12] : memref<16x128xf32, #tpu.memory_space<vmem>>, vector<16x128xf32>
      tpu.vector_store %arg6[%c0_11, %c0_12], %12 {strides = array<i32>} : memref<16x128xf32, #tpu.memory_space<vmem>>, vector<16x128xf32>,
    } else {
    }
    %c0 = arith.constant 0 : index
    %c0_1 = arith.constant 0 : index
    %3 = vector.load %arg6[%c0, %c0_1] : memref<16x128xf32, #tpu.memory_space<vmem>>, vector<16x128xf32>
    %c0_2 = arith.constant 0 : index
    %c0_3 = arith.constant 0 : index
    %4 = vector.load %arg2[%c0_2, %c0_3] : memref<16x16xf32, #tpu.memory_space<vmem>>, vector<16x16xf32>
    %c0_4 = arith.constant 0 : index
    %c0_5 = arith.constant 0 : index
    %5 = vector.load %arg3[%c0_4, %c0_5] : memref<16x128xf32, #tpu.memory_space<vmem>>, vector<16x128xf32>
    %cst = arith.constant dense<0.000000e+00> : vector<16x128xf32>
    %6 = tpu.matmul %4, %5, %cst {dimension_numbers = #tpu.dot_dimension_numbers<[1], [0], [0], [1], [0, 0, 1, 1], [], []>} : vector<16x16xf32>, vector<16x128xf32>, vector<16x128xf32> -> vector<16x128xf32>
    %7 = arith.addf %3, %6 : vector<16x128xf32>
    %c0_6 = arith.constant 0 : index
    %c0_7 = arith.constant 0 : index
    %8 = vector.load %arg6[%c0_6, %c0_7] : memref<16x128xf32, #tpu.memory_space<vmem>>, vector<16x128xf32>
    tpu.vector_store %arg6[%c0_6, %c0_7], %7 {strides = array<i32>} : memref<16x128xf32, #tpu.memory_space<vmem>>, vector<16x128xf32>,
    %c0_i32_8 = arith.constant 0 : i32
    %9 = arith.cmpi eq, %arg1, %c0_i32_8 : i32
    %10 = arith.extui %9 : i1 to i32
    %c0_i32_9 = arith.constant 0 : i32
    %11 = arith.cmpi ne, %10, %c0_i32_9 : i32
    scf.if %11 {
      %c0_10 = arith.constant 0 : index
      %c0_11 = arith.constant 0 : index
      %12 = vector.load %arg6[%c0_10, %c0_11] : memref<16x128xf32, #tpu.memory_space<vmem>>, vector<16x128xf32>
      %c0_12 = arith.constant 0 : index
      %c0_13 = arith.constant 0 : index
      %13 = vector.load %arg4[%c0_12, %c0_13] : memref<1x128xf32, #tpu.memory_space<vmem>>, vector<1x128xf32>
      %14 = vector.broadcast %13 : vector<1x128xf32> to vector<16x128xf32>
      %15 = arith.addf %12, %14 : vector<16x128xf32>
      %cst_14 = arith.constant 0.000000e+00 : f32
      %16 = vector.broadcast %cst_14 : f32 to vector<16x128xf32>
      %17 = arith.maximumf %15, %16 : vector<16x128xf32>
      %c0_15 = arith.constant 0 : index
      %c0_16 = arith.constant 0 : index
      %18 = vector.load %arg5[%c0_15, %c0_16] : memref<16x128xf32, #tpu.memory_space<vmem>>, vector<16x128xf32>
      tpu.vector_store %arg5[%c0_15, %c0_16], %17 {strides = array<i32>} : memref<16x128xf32, #tpu.memory_space<vmem>>, vector<16x128xf32>,
    } else {
    }
    return
  }
  func.func @transform_0(%arg0: i32, %arg1: i32) -> (i32, i32) {
    %c0_i32 = arith.constant 0 : i32
    return %arg0, %arg1 : i32, i32
  }
  func.func @transform_1(%arg0: i32, %arg1: i32) -> (i32, i32) {
    %c0_i32 = arith.constant 0 : i32
    %c0_i32_0 = arith.constant 0 : i32
    return %arg1, %c0_i32 : i32, i32
  }
  func.func @transform_2(%arg0: i32, %arg1: i32) -> (i32, i32) {
    %c0_i32 = arith.constant 0 : i32
    %c0_i32_0 = arith.constant 0 : i32
    %c0_i32_1 = arith.constant 0 : i32
    return %c0_i32, %c0_i32_0 : i32, i32
  }
  func.func @transform_3(%arg0: i32, %arg1: i32) -> (i32, i32) {
    %c0_i32 = arith.constant 0 : i32
    %c0_i32_0 = arith.constant 0 : i32
    return %arg0, %c0_i32 : i32, i32
  }
}

module attributes {stable_mosaic.version = 11 : i64} {
  func.func @agg_kernel(%arg0: i32, %arg1: i32, %arg2: memref<16x16xf32, #tpu.memory_space<vmem>>, %arg3: memref<16x128xf32, #tpu.memory_space<vmem>>, %arg4: memref<1x128xf32, #tpu.memory_space<vmem>>, %arg5: memref<16x128xf32, #tpu.memory_space<vmem>>, %arg6: memref<16x128xf32, #tpu.memory_space<vmem>>) attributes {dimension_semantics = [#tpu.dimension_semantics<parallel>, #tpu.dimension_semantics<arbitrary>], iteration_bounds = array<i64: 1, 1>, scalar_prefetch = 0 : i64, scratch_operands = 1 : i64, tpu.core_type = #tpu.core_type<tc>, window_params = [{transform_indices = @transform_0, window_bounds = array<i64: 16, 16>}, {transform_indices = @transform_1, window_bounds = array<i64: 16, 128>}, {pipeline_mode = #tpu.pipeline_mode<synchronous>, transform_indices = @transform_2, window_bounds = array<i64: 1, 128>}, {transform_indices = @transform_3, window_bounds = array<i64: 16, 128>}]} {
    %c0_i32 = arith.constant 0 : i32
    %0 = arith.cmpi eq, %arg1, %c0_i32 : i32
    %1 = arith.extui %0 : i1 to i32
    %c0_i32_0 = arith.constant 0 : i32
    %2 = arith.cmpi ne, %1, %c0_i32_0 : i32
    scf.if %2 {
      %cst_10 = arith.constant 0.000000e+00 : f32
      %12 = vector.broadcast %cst_10 : f32 to vector<16x128xf32>
      %c0_11 = arith.constant 0 : index
      %c0_12 = arith.constant 0 : index
      %13 = vector.load %arg6[%c0_11, %c0_12] : memref<16x128xf32, #tpu.memory_space<vmem>>, vector<16x128xf32>
      tpu.vector_store %arg6[%c0_11, %c0_12], %12 {strides = array<i32>} : memref<16x128xf32, #tpu.memory_space<vmem>>, vector<16x128xf32>,
    } else {
    }
    %c0 = arith.constant 0 : index
    %c0_1 = arith.constant 0 : index
    %3 = vector.load %arg6[%c0, %c0_1] : memref<16x128xf32, #tpu.memory_space<vmem>>, vector<16x128xf32>
    %c0_2 = arith.constant 0 : index
    %c0_3 = arith.constant 0 : index
    %4 = vector.load %arg2[%c0_2, %c0_3] : memref<16x16xf32, #tpu.memory_space<vmem>>, vector<16x16xf32>
    %c0_4 = arith.constant 0 : index
    %c0_5 = arith.constant 0 : index
    %5 = vector.load %arg3[%c0_4, %c0_5] : memref<16x128xf32, #tpu.memory_space<vmem>>, vector<16x128xf32>
    %cst = arith.constant dense<0.000000e+00> : vector<16x128xf32>
    %6 = tpu.matmul %4, %5, %cst {dimension_numbers = #tpu.dot_dimension_numbers<[1], [0], [0], [1], [0, 0, 1, 1], [], []>} : vector<16x16xf32>, vector<16x128xf32>, vector<16x128xf32> -> vector<16x128xf32>
    %7 = arith.addf %3, %6 : vector<16x128xf32>
    %c0_6 = arith.constant 0 : index
    %c0_7 = arith.constant 0 : index
    %8 = vector.load %arg6[%c0_6, %c0_7] : memref<16x128xf32, #tpu.memory_space<vmem>>, vector<16x128xf32>
    tpu.vector_store %arg6[%c0_6, %c0_7], %7 {strides = array<i32>} : memref<16x128xf32, #tpu.memory_space<vmem>>, vector<16x128xf32>,
    %c0_i32_8 = arith.constant 0 : i32
    %9 = arith.cmpi eq, %arg1, %c0_i32_8 : i32
    %10 = arith.extui %9 : i1 to i32
    %c0_i32_9 = arith.constant 0 : i32
    %11 = arith.cmpi ne, %10, %c0_i32_9 : i32
    scf.if %11 {
      %c0_10 = arith.constant 0 : index
      %c0_11 = arith.constant 0 : index
      %12 = vector.load %arg6[%c0_10, %c0_11] : memref<16x128xf32, #tpu.memory_space<vmem>>, vector<16x128xf32>
      %c0_12 = arith.constant 0 : index
      %c0_13 = arith.constant 0 : index
      %13 = vector.load %arg4[%c0_12, %c0_13] : memref<1x128xf32, #tpu.memory_space<vmem>>, vector<1x128xf32>
      %14 = vector.broadcast %13 : vector<1x128xf32> to vector<16x128xf32>
      %15 = arith.addf %12, %14 : vector<16x128xf32>
      %c0_14 = arith.constant 0 : index
      %c0_15 = arith.constant 0 : index
      %16 = vector.load %arg5[%c0_14, %c0_15] : memref<16x128xf32, #tpu.memory_space<vmem>>, vector<16x128xf32>
      tpu.vector_store %arg5[%c0_14, %c0_15], %15 {strides = array<i32>} : memref<16x128xf32, #tpu.memory_space<vmem>>, vector<16x128xf32>,
    } else {
    }
    return
  }
  func.func @transform_0(%arg0: i32, %arg1: i32) -> (i32, i32) {
    %c0_i32 = arith.constant 0 : i32
    return %arg0, %arg1 : i32, i32
  }
  func.func @transform_1(%arg0: i32, %arg1: i32) -> (i32, i32) {
    %c0_i32 = arith.constant 0 : i32
    %c0_i32_0 = arith.constant 0 : i32
    return %arg1, %c0_i32 : i32, i32
  }
  func.func @transform_2(%arg0: i32, %arg1: i32) -> (i32, i32) {
    %c0_i32 = arith.constant 0 : i32
    %c0_i32_0 = arith.constant 0 : i32
    %c0_i32_1 = arith.constant 0 : i32
    return %c0_i32, %c0_i32_0 : i32, i32
  }
  func.func @transform_3(%arg0: i32, %arg1: i32) -> (i32, i32) {
    %c0_i32 = arith.constant 0 : i32
    %c0_i32_0 = arith.constant 0 : i32
    return %arg0, %c0_i32 : i32, i32
  }
}

module attributes {stable_mosaic.version = 11 : i64} {
  func.func @gru_kernel(%arg0: i32, %arg1: memref<16x128xf32, #tpu.memory_space<vmem>>, %arg2: memref<16x128xf32, #tpu.memory_space<vmem>>, %arg3: memref<128x384xf32, #tpu.memory_space<vmem>>, %arg4: memref<128x384xf32, #tpu.memory_space<vmem>>, %arg5: memref<1x384xf32, #tpu.memory_space<vmem>>, %arg6: memref<1x384xf32, #tpu.memory_space<vmem>>, %arg7: memref<16x128xf32, #tpu.memory_space<vmem>>) attributes {dimension_semantics = [#tpu.dimension_semantics<parallel>], iteration_bounds = array<i64: 1>, scalar_prefetch = 0 : i64, scratch_operands = 0 : i64, tpu.core_type = #tpu.core_type<tc>, window_params = [{transform_indices = @transform_0, window_bounds = array<i64: 16, 128>}, {transform_indices = @transform_1, window_bounds = array<i64: 16, 128>}, {pipeline_mode = #tpu.pipeline_mode<synchronous>, transform_indices = @transform_2, window_bounds = array<i64: 128, 384>}, {pipeline_mode = #tpu.pipeline_mode<synchronous>, transform_indices = @transform_3, window_bounds = array<i64: 128, 384>}, {pipeline_mode = #tpu.pipeline_mode<synchronous>, transform_indices = @transform_4, window_bounds = array<i64: 1, 384>}, {pipeline_mode = #tpu.pipeline_mode<synchronous>, transform_indices = @transform_5, window_bounds = array<i64: 1, 384>}, {transform_indices = @transform_6, window_bounds = array<i64: 16, 128>}]} {
    %c0 = arith.constant 0 : index
    %c0_0 = arith.constant 0 : index
    %0 = vector.load %arg1[%c0, %c0_0] : memref<16x128xf32, #tpu.memory_space<vmem>>, vector<16x128xf32>
    %c0_1 = arith.constant 0 : index
    %c0_2 = arith.constant 0 : index
    %1 = vector.load %arg2[%c0_1, %c0_2] : memref<16x128xf32, #tpu.memory_space<vmem>>, vector<16x128xf32>
    %c0_3 = arith.constant 0 : index
    %c0_4 = arith.constant 0 : index
    %2 = vector.load %arg3[%c0_3, %c0_4] : memref<128x384xf32, #tpu.memory_space<vmem>>, vector<128x384xf32>
    %cst = arith.constant dense<0.000000e+00> : vector<16x384xf32>
    %3 = tpu.matmul %0, %2, %cst {dimension_numbers = #tpu.dot_dimension_numbers<[1], [0], [0], [1], [0, 0, 1, 1], [], []>} : vector<16x128xf32>, vector<128x384xf32>, vector<16x384xf32> -> vector<16x384xf32>
    %c0_5 = arith.constant 0 : index
    %c0_6 = arith.constant 0 : index
    %4 = vector.load %arg5[%c0_5, %c0_6] : memref<1x384xf32, #tpu.memory_space<vmem>>, vector<1x384xf32>
    %5 = vector.broadcast %4 : vector<1x384xf32> to vector<16x384xf32>
    %6 = arith.addf %3, %5 : vector<16x384xf32>
    %c0_7 = arith.constant 0 : index
    %c0_8 = arith.constant 0 : index
    %7 = vector.load %arg4[%c0_7, %c0_8] : memref<128x384xf32, #tpu.memory_space<vmem>>, vector<128x384xf32>
    %cst_9 = arith.constant dense<0.000000e+00> : vector<16x384xf32>
    %8 = tpu.matmul %1, %7, %cst_9 {dimension_numbers = #tpu.dot_dimension_numbers<[1], [0], [0], [1], [0, 0, 1, 1], [], []>} : vector<16x128xf32>, vector<128x384xf32>, vector<16x384xf32> -> vector<16x384xf32>
    %c0_10 = arith.constant 0 : index
    %c0_11 = arith.constant 0 : index
    %9 = vector.load %arg6[%c0_10, %c0_11] : memref<1x384xf32, #tpu.memory_space<vmem>>, vector<1x384xf32>
    %10 = vector.broadcast %9 : vector<1x384xf32> to vector<16x384xf32>
    %11 = arith.addf %8, %10 : vector<16x384xf32>
    %12 = vector.extract_strided_slice %6 {offsets = [0, 0], sizes = [16, 128], strides = [1, 1]} : vector<16x384xf32> to vector<16x128xf32>
    %13 = vector.extract_strided_slice %11 {offsets = [0, 0], sizes = [16, 128], strides = [1, 1]} : vector<16x384xf32> to vector<16x128xf32>
    %14 = arith.addf %12, %13 : vector<16x128xf32>
    %15 = arith.negf %14 : vector<16x128xf32>
    %16 = math.exp %15 : vector<16x128xf32>
    %cst_12 = arith.constant 1.000000e+00 : f32
    %17 = vector.broadcast %cst_12 : f32 to vector<16x128xf32>
    %18 = arith.addf %17, %16 : vector<16x128xf32>
    %19 = arith.divf %17, %18 : vector<16x128xf32>
    %20 = vector.extract_strided_slice %6 {offsets = [0, 128], sizes = [16, 128], strides = [1, 1]} : vector<16x384xf32> to vector<16x128xf32>
    %21 = vector.extract_strided_slice %11 {offsets = [0, 128], sizes = [16, 128], strides = [1, 1]} : vector<16x384xf32> to vector<16x128xf32>
    %22 = arith.addf %20, %21 : vector<16x128xf32>
    %23 = arith.negf %22 : vector<16x128xf32>
    %24 = math.exp %23 : vector<16x128xf32>
    %cst_13 = arith.constant 1.000000e+00 : f32
    %25 = vector.broadcast %cst_13 : f32 to vector<16x128xf32>
    %26 = arith.addf %25, %24 : vector<16x128xf32>
    %27 = arith.divf %25, %26 : vector<16x128xf32>
    %28 = vector.extract_strided_slice %6 {offsets = [0, 256], sizes = [16, 128], strides = [1, 1]} : vector<16x384xf32> to vector<16x128xf32>
    %29 = vector.extract_strided_slice %11 {offsets = [0, 256], sizes = [16, 128], strides = [1, 1]} : vector<16x384xf32> to vector<16x128xf32>
    %30 = arith.mulf %19, %29 : vector<16x128xf32>
    %31 = arith.addf %28, %30 : vector<16x128xf32>
    %32 = math.tanh %31 : vector<16x128xf32>
    %cst_14 = arith.constant 1.000000e+00 : f32
    %33 = vector.broadcast %cst_14 : f32 to vector<16x128xf32>
    %34 = arith.subf %33, %27 : vector<16x128xf32>
    %35 = arith.mulf %34, %32 : vector<16x128xf32>
    %36 = arith.mulf %27, %1 : vector<16x128xf32>
    %37 = arith.addf %35, %36 : vector<16x128xf32>
    %c0_15 = arith.constant 0 : index
    %c0_16 = arith.constant 0 : index
    %38 = vector.load %arg7[%c0_15, %c0_16] : memref<16x128xf32, #tpu.memory_space<vmem>>, vector<16x128xf32>
    tpu.vector_store %arg7[%c0_15, %c0_16], %37 {strides = array<i32>} : memref<16x128xf32, #tpu.memory_space<vmem>>, vector<16x128xf32>,
    return
  }
  func.func @transform_0(%arg0: i32) -> (i32, i32) {
    %c0_i32 = arith.constant 0 : i32
    %c0_i32_0 = arith.constant 0 : i32
    return %arg0, %c0_i32 : i32, i32
  }
  func.func @transform_1(%arg0: i32) -> (i32, i32) {
    %c0_i32 = arith.constant 0 : i32
    %c0_i32_0 = arith.constant 0 : i32
    return %arg0, %c0_i32 : i32, i32
  }
  func.func @transform_2(%arg0: i32) -> (i32, i32) {
    %c0_i32 = arith.constant 0 : i32
    %c0_i32_0 = arith.constant 0 : i32
    %c0_i32_1 = arith.constant 0 : i32
    return %c0_i32, %c0_i32_0 : i32, i32
  }
  func.func @transform_3(%arg0: i32) -> (i32, i32) {
    %c0_i32 = arith.constant 0 : i32
    %c0_i32_0 = arith.constant 0 : i32
    %c0_i32_1 = arith.constant 0 : i32
    return %c0_i32, %c0_i32_0 : i32, i32
  }
  func.func @transform_4(%arg0: i32) -> (i32, i32) {
    %c0_i32 = arith.constant 0 : i32
    %c0_i32_0 = arith.constant 0 : i32
    %c0_i32_1 = arith.constant 0 : i32
    return %c0_i32, %c0_i32_0 : i32, i32
  }
  func.func @transform_5(%arg0: i32) -> (i32, i32) {
    %c0_i32 = arith.constant 0 : i32
    %c0_i32_0 = arith.constant 0 : i32
    %c0_i32_1 = arith.constant 0 : i32
    return %c0_i32, %c0_i32_0 : i32, i32
  }
  func.func @transform_6(%arg0: i32) -> (i32, i32) {
    %c0_i32 = arith.constant 0 : i32
    %c0_i32_0 = arith.constant 0 : i32
    return %arg0, %c0_i32 : i32, i32
  }
}

module attributes {stable_mosaic.version = 11 : i64} {
  func.func @decoder_kernel(%arg0: i32, %arg1: memref<8x256xf32, #tpu.memory_space<vmem>>, %arg2: memref<256x128xf32, #tpu.memory_space<vmem>>, %arg3: memref<1x128xf32, #tpu.memory_space<vmem>>, %arg4: memref<128x128xf32, #tpu.memory_space<vmem>>, %arg5: memref<1x128xf32, #tpu.memory_space<vmem>>, %arg6: memref<8x128xf32, #tpu.memory_space<vmem>>) attributes {dimension_semantics = [#tpu.dimension_semantics<parallel>], iteration_bounds = array<i64: 1>, scalar_prefetch = 0 : i64, scratch_operands = 0 : i64, tpu.core_type = #tpu.core_type<tc>, window_params = [{transform_indices = @transform_0, window_bounds = array<i64: 8, 256>}, {pipeline_mode = #tpu.pipeline_mode<synchronous>, transform_indices = @transform_1, window_bounds = array<i64: 256, 128>}, {pipeline_mode = #tpu.pipeline_mode<synchronous>, transform_indices = @transform_2, window_bounds = array<i64: 1, 128>}, {pipeline_mode = #tpu.pipeline_mode<synchronous>, transform_indices = @transform_3, window_bounds = array<i64: 128, 128>}, {pipeline_mode = #tpu.pipeline_mode<synchronous>, transform_indices = @transform_4, window_bounds = array<i64: 1, 128>}, {transform_indices = @transform_5, window_bounds = array<i64: 8, 128>}]} {
    %c0 = arith.constant 0 : index
    %c0_0 = arith.constant 0 : index
    %0 = vector.load %arg1[%c0, %c0_0] : memref<8x256xf32, #tpu.memory_space<vmem>>, vector<8x256xf32>
    %c0_1 = arith.constant 0 : index
    %c0_2 = arith.constant 0 : index
    %1 = vector.load %arg2[%c0_1, %c0_2] : memref<256x128xf32, #tpu.memory_space<vmem>>, vector<256x128xf32>
    %cst = arith.constant dense<0.000000e+00> : vector<8x128xf32>
    %2 = tpu.matmul %0, %1, %cst {dimension_numbers = #tpu.dot_dimension_numbers<[1], [0], [0], [1], [0, 0, 1, 1], [], []>} : vector<8x256xf32>, vector<256x128xf32>, vector<8x128xf32> -> vector<8x128xf32>
    %c0_3 = arith.constant 0 : index
    %c0_4 = arith.constant 0 : index
    %3 = vector.load %arg3[%c0_3, %c0_4] : memref<1x128xf32, #tpu.memory_space<vmem>>, vector<1x128xf32>
    %4 = vector.broadcast %3 : vector<1x128xf32> to vector<8x128xf32>
    %5 = arith.addf %2, %4 : vector<8x128xf32>
    %cst_5 = arith.constant 0.000000e+00 : f32
    %6 = vector.broadcast %cst_5 : f32 to vector<8x128xf32>
    %7 = arith.maximumf %5, %6 : vector<8x128xf32>
    %c0_6 = arith.constant 0 : index
    %c0_7 = arith.constant 0 : index
    %8 = vector.load %arg4[%c0_6, %c0_7] : memref<128x128xf32, #tpu.memory_space<vmem>>, vector<128x128xf32>
    %cst_8 = arith.constant dense<0.000000e+00> : vector<8x128xf32>
    %9 = tpu.matmul %7, %8, %cst_8 {dimension_numbers = #tpu.dot_dimension_numbers<[1], [0], [0], [1], [0, 0, 1, 1], [], []>} : vector<8x128xf32>, vector<128x128xf32>, vector<8x128xf32> -> vector<8x128xf32>
    %c0_9 = arith.constant 0 : index
    %c0_10 = arith.constant 0 : index
    %10 = vector.load %arg5[%c0_9, %c0_10] : memref<1x128xf32, #tpu.memory_space<vmem>>, vector<1x128xf32>
    %11 = vector.broadcast %10 : vector<1x128xf32> to vector<8x128xf32>
    %12 = arith.addf %9, %11 : vector<8x128xf32>
    %c0_11 = arith.constant 0 : index
    %c0_12 = arith.constant 0 : index
    %13 = vector.load %arg6[%c0_11, %c0_12] : memref<8x128xf32, #tpu.memory_space<vmem>>, vector<8x128xf32>
    tpu.vector_store %arg6[%c0_11, %c0_12], %12 {strides = array<i32>} : memref<8x128xf32, #tpu.memory_space<vmem>>, vector<8x128xf32>,
    return
  }
  func.func @transform_0(%arg0: i32) -> (i32, i32) {
    %c0_i32 = arith.constant 0 : i32
    %c0_i32_0 = arith.constant 0 : i32
    return %arg0, %c0_i32 : i32, i32
  }
  func.func @transform_1(%arg0: i32) -> (i32, i32) {
    %c0_i32 = arith.constant 0 : i32
    %c0_i32_0 = arith.constant 0 : i32
    %c0_i32_1 = arith.constant 0 : i32
    return %c0_i32, %c0_i32_0 : i32, i32
  }
  func.func @transform_2(%arg0: i32) -> (i32, i32) {
    %c0_i32 = arith.constant 0 : i32
    %c0_i32_0 = arith.constant 0 : i32
    %c0_i32_1 = arith.constant 0 : i32
    return %c0_i32, %c0_i32_0 : i32, i32
  }
  func.func @transform_3(%arg0: i32) -> (i32, i32) {
    %c0_i32 = arith.constant 0 : i32
    %c0_i32_0 = arith.constant 0 : i32
    %c0_i32_1 = arith.constant 0 : i32
    return %c0_i32, %c0_i32_0 : i32, i32
  }
  func.func @transform_4(%arg0: i32) -> (i32, i32) {
    %c0_i32 = arith.constant 0 : i32
    %c0_i32_0 = arith.constant 0 : i32
    %c0_i32_1 = arith.constant 0 : i32
    return %c0_i32, %c0_i32_0 : i32, i32
  }
  func.func @transform_5(%arg0: i32) -> (i32, i32) {
    %c0_i32 = arith.constant 0 : i32
    %c0_i32_0 = arith.constant 0 : i32
    return %arg0, %c0_i32 : i32, i32
  }
}

</mosaic_0001>

<bundles_post_ra>
// kernel: dygcn_forward.7
= control target key start
LH: loop header
LB: loop body
LE: loop exit
PB: predicated region body
PF: predicated region fallthrough
CT: control target
= control target key end

     0   :  { %s167_s1 = inlined_call_operand.vmem [shape: f32[128,128], index: 1, kind: input, shape index: {}]   ;;  %s168_s2 = inlined_call_operand.vmem [shape: f32[1,128], index: 2, kind: input, shape index: {}]   ;;  %s169_s0 = inlined_call_operand.vmem [shape: f32[16,128], index: 0, kind: input, shape index: {}]   ;;  %s170_s3 = inlined_call_operand.vmem [shape: f32[16,128], index: 3, kind: output, shape index: {}]  }
   0x1   :  { %v31_v0 = vld [vmem:[%s167_s1 + $0x78] sm:$0xff]  ;;  %v30_v1 = vld [vmem:[%s167_s1 + $0x70] sm:$0xff]  ;;  %v29_v2 = vld [vmem:[%s167_s1 + $0x68] sm:$0xff] }
   0x2   :  { %36 = vmatpush.msra.mxu0 %v31_v0  ;;  %67 = vmatpush.msra.mxu1 %v31_v0  ;;  %v28_v3 = vld [vmem:[%s167_s1 + $0x60] sm:$0xff]  ;;  %v27_v4 = vld [vmem:[%s167_s1 + $0x58] sm:$0xff]  ;;  %v26_v5 = vld [vmem:[%s167_s1 + $0x50] sm:$0xff] }
   0x3   :  { %v25_v6 = vld [vmem:[%s167_s1 + $0x48] sm:$0xff]  ;;  %v24_v7 = vld [vmem:[%s167_s1 + $0x40] sm:$0xff]  ;;  %v23_v8 = vld [vmem:[%s167_s1 + $0x38] sm:$0xff] }
   0x4   :  { %37 = vmatpush.msra.mxu0 %v30_v1  ;;  %68 = vmatpush.msra.mxu1 %v30_v1  ;;  %v22_v9 = vld [vmem:[%s167_s1 + $0x30] sm:$0xff]  ;;  %v21_v10 = vld [vmem:[%s167_s1 + $0x28] sm:$0xff]  ;;  %v20_v11 = vld [vmem:[%s167_s1 + $0x20] sm:$0xff] }
   0x5   :  { %v19_v12 = vld [vmem:[%s167_s1 + $0x18] sm:$0xff]  ;;  %v18_v13 = vld [vmem:[%s167_s1 + $0x10] sm:$0xff]  ;;  %v17_v14 = vld [vmem:[%s167_s1 + $0x8] sm:$0xff] }
   0x6   :  { %38 = vmatpush.msra.mxu0 %v29_v2  ;;  %69 = vmatpush.msra.mxu1 %v29_v2  ;;  %v16_v15 = vld [vmem:[%s167_s1] sm:$0xff]  ;;  %v15_v17 = vld [vmem:[%s169_s0 + $0x8] sm:$0xff] }
   0x7   :  { %v14_v16 = vld [vmem:[%s169_s0] sm:$0xff] }
   0x8   :  { %39 = vmatpush.msra.mxu0 %v28_v3  ;;  %70 = vmatpush.msra.mxu1 %v28_v3  ;;  %v83_v18 = vld [vmem:[%s168_s2] ss:$0 sm:$0xff] }
   0xa   :  { %40 = vmatpush.msra.mxu0 %v27_v4  ;;  %71 = vmatpush.msra.mxu1 %v27_v4 }
   0xc   :  { %41 = vmatpush.msra.mxu0 %v26_v5  ;;  %72 = vmatpush.msra.mxu1 %v26_v5 }
   0xe   :  { %42 = vmatpush.msra.mxu0 %v25_v6  ;;  %73 = vmatpush.msra.mxu1 %v25_v6 }
  0x10   :  { %43 = vmatpush.msra.mxu0 %v24_v7  ;;  %74 = vmatpush.msra.mxu1 %v24_v7 }
  0x12   :  { %44 = vmatpush.msra.mxu0 %v23_v8  ;;  %75 = vmatpush.msra.mxu1 %v23_v8 }
  0x14   :  { %45 = vmatpush.msra.mxu0 %v22_v9  ;;  %76 = vmatpush.msra.mxu1 %v22_v9 }
  0x16   :  { %46 = vmatpush.msra.mxu0 %v21_v10  ;;  %77 = vmatpush.msra.mxu1 %v21_v10 }
  0x18   :  { %47 = vmatpush.msra.mxu0 %v20_v11  ;;  %78 = vmatpush.msra.mxu1 %v20_v11 }
  0x1a   :  { %48 = vmatpush.msra.mxu0 %v19_v12  ;;  %79 = vmatpush.msra.mxu1 %v19_v12 }
  0x1c   :  { %49 = vmatpush.msra.mxu0 %v18_v13  ;;  %80 = vmatpush.msra.mxu1 %v18_v13 }
  0x1e   :  { %50 = vmatpush.msra.mxu0 %v17_v14  ;;  %81 = vmatpush.msra.mxu1 %v17_v14 }
  0x20   :  { %51 = vmatpush.msra.mxu0 %v16_v15  ;;  %82 = vmatpush.msra.mxu1 %v16_v15 }
  0x21   :  { %52 = vmatmul.f32.vlgmr.msra.gmra.mxu0 %v14_v16  ;;  %55 = vmatmul.f32.vlgmr.msra.gmra.mxu1 %v15_v17 }
  0x9e   :  { %v53_v19 = vpop.f32.mrf.mxu0  ;;  %v56_v20 = vpop.f32.mrf.mxu1 }
  0x9f   :  { %v54_v21 = vadd.f32 %v83_v18, %v53_v19  ;;  %v57_v22 = vadd.f32 %v83_v18, %v56_v20 }
  0xa1   :  { %v59_v23 = vmax.f32 %v54_v21, 0.0  ;;  %v60_v24 = vmax.f32 %v57_v22, 0.0 }
  0xa3   :  { %61 = vst [vmem:[%s170_s3] sm:$0xff] %v59_v23 }
  0xa4   :  { %62 = vst [vmem:[%s170_s3 + $0x8] sm:$0xff] %v60_v24 }

// kernel: dygcn_forward.8
= control target key start
LH: loop header
LB: loop body
LE: loop exit
PB: predicated region body
PF: predicated region fallthrough
CT: control target
= control target key end

     0   :  { %s165_s1 = inlined_call_operand.vmem [shape: f32[128,128], index: 1, kind: input, shape index: {}]   ;;  %s166_s2 = inlined_call_operand.vmem [shape: f32[1,128], index: 2, kind: input, shape index: {}]   ;;  %s167_s0 = inlined_call_operand.vmem [shape: f32[16,128], index: 0, kind: input, shape index: {}]   ;;  %s168_s3 = inlined_call_operand.vmem [shape: f32[16,128], index: 3, kind: output, shape index: {}]  }
   0x1   :  { %v31_v0 = vld [vmem:[%s165_s1 + $0x78] sm:$0xff]  ;;  %v30_v1 = vld [vmem:[%s165_s1 + $0x70] sm:$0xff]  ;;  %v29_v2 = vld [vmem:[%s165_s1 + $0x68] sm:$0xff] }
   0x2   :  { %36 = vmatpush.msra.mxu0 %v31_v0  ;;  %65 = vmatpush.msra.mxu1 %v31_v0  ;;  %v28_v3 = vld [vmem:[%s165_s1 + $0x60] sm:$0xff]  ;;  %v27_v4 = vld [vmem:[%s165_s1 + $0x58] sm:$0xff]  ;;  %v26_v5 = vld [vmem:[%s165_s1 + $0x50] sm:$0xff] }
   0x3   :  { %v25_v6 = vld [vmem:[%s165_s1 + $0x48] sm:$0xff]  ;;  %v24_v7 = vld [vmem:[%s165_s1 + $0x40] sm:$0xff]  ;;  %v23_v8 = vld [vmem:[%s165_s1 + $0x38] sm:$0xff] }
   0x4   :  { %37 = vmatpush.msra.mxu0 %v30_v1  ;;  %66 = vmatpush.msra.mxu1 %v30_v1  ;;  %v22_v9 = vld [vmem:[%s165_s1 + $0x30] sm:$0xff]  ;;  %v21_v10 = vld [vmem:[%s165_s1 + $0x28] sm:$0xff]  ;;  %v20_v11 = vld [vmem:[%s165_s1 + $0x20] sm:$0xff] }
   0x5   :  { %v19_v12 = vld [vmem:[%s165_s1 + $0x18] sm:$0xff]  ;;  %v18_v13 = vld [vmem:[%s165_s1 + $0x10] sm:$0xff]  ;;  %v17_v14 = vld [vmem:[%s165_s1 + $0x8] sm:$0xff] }
   0x6   :  { %38 = vmatpush.msra.mxu0 %v29_v2  ;;  %67 = vmatpush.msra.mxu1 %v29_v2  ;;  %v16_v15 = vld [vmem:[%s165_s1] sm:$0xff]  ;;  %v15_v17 = vld [vmem:[%s167_s0 + $0x8] sm:$0xff] }
   0x7   :  { %v14_v16 = vld [vmem:[%s167_s0] sm:$0xff] }
   0x8   :  { %39 = vmatpush.msra.mxu0 %v28_v3  ;;  %68 = vmatpush.msra.mxu1 %v28_v3  ;;  %v81_v18 = vld [vmem:[%s166_s2] ss:$0 sm:$0xff] }
   0xa   :  { %40 = vmatpush.msra.mxu0 %v27_v4  ;;  %69 = vmatpush.msra.mxu1 %v27_v4 }
   0xc   :  { %41 = vmatpush.msra.mxu0 %v26_v5  ;;  %70 = vmatpush.msra.mxu1 %v26_v5 }
   0xe   :  { %42 = vmatpush.msra.mxu0 %v25_v6  ;;  %71 = vmatpush.msra.mxu1 %v25_v6 }
  0x10   :  { %43 = vmatpush.msra.mxu0 %v24_v7  ;;  %72 = vmatpush.msra.mxu1 %v24_v7 }
  0x12   :  { %44 = vmatpush.msra.mxu0 %v23_v8  ;;  %73 = vmatpush.msra.mxu1 %v23_v8 }
  0x14   :  { %45 = vmatpush.msra.mxu0 %v22_v9  ;;  %74 = vmatpush.msra.mxu1 %v22_v9 }
  0x16   :  { %46 = vmatpush.msra.mxu0 %v21_v10  ;;  %75 = vmatpush.msra.mxu1 %v21_v10 }
  0x18   :  { %47 = vmatpush.msra.mxu0 %v20_v11  ;;  %76 = vmatpush.msra.mxu1 %v20_v11 }
  0x1a   :  { %48 = vmatpush.msra.mxu0 %v19_v12  ;;  %77 = vmatpush.msra.mxu1 %v19_v12 }
  0x1c   :  { %49 = vmatpush.msra.mxu0 %v18_v13  ;;  %78 = vmatpush.msra.mxu1 %v18_v13 }
  0x1e   :  { %50 = vmatpush.msra.mxu0 %v17_v14  ;;  %79 = vmatpush.msra.mxu1 %v17_v14 }
  0x20   :  { %51 = vmatpush.msra.mxu0 %v16_v15  ;;  %80 = vmatpush.msra.mxu1 %v16_v15 }
  0x21   :  { %52 = vmatmul.f32.vlgmr.msra.gmra.mxu0 %v14_v16  ;;  %55 = vmatmul.f32.vlgmr.msra.gmra.mxu1 %v15_v17 }
  0x9e   :  { %v53_v19 = vpop.f32.mrf.mxu0  ;;  %v56_v20 = vpop.f32.mrf.mxu1 }
  0x9f   :  { %v54_v21 = vadd.f32 %v81_v18, %v53_v19  ;;  %v57_v22 = vadd.f32 %v81_v18, %v56_v20 }
  0xa1   :  { %59 = vst [vmem:[%s168_s3] sm:$0xff] %v54_v21 }
  0xa2   :  { %60 = vst [vmem:[%s168_s3 + $0x8] sm:$0xff] %v57_v22 }

// kernel: dygcn_forward.9
= control target key start
LH: loop header
LB: loop body
LE: loop exit
PB: predicated region body
PF: predicated region fallthrough
CT: control target
= control target key end

     0   :  { %vm26_vm0 = vcmask 130048   ;;  %s125_s1 = inlined_call_operand.vmem [shape: f32[16,128], index: 1, kind: input, shape index: {}]   ;;  %s126_s0 = inlined_call_operand.vmem [shape: f32[16,16], index: 0, kind: input, shape index: {}]   ;;  %s127_s2 = inlined_call_operand.vmem [shape: f32[1,128], index: 2, kind: input, shape index: {}]   ;;  %s128_s3 = inlined_call_operand.vmem [shape: f32[16,128], index: 3, kind: output, shape index: {}]  }
   0x1   :  { %v25_v0 = vld [vmem:[%s125_s1 + $0x8] sm:$0xff]  ;;  %v24_v1 = vld [vmem:[%s125_s1] sm:$0xff] }
   0x2   :  { %47 = vmatpush.msra.mxu0 %v25_v0  ;;  %81 = vmatpush.msra.mxu1 %v25_v0  ;;  %v22_v2 = vld [vmem:[%s126_s0] sm:$0xff]  ;;  %v23_v3 = vld [vmem:[%s126_s0 + $0x8] sm:$0xff] }
   0x3   :  { %v83_v4 = vld [vmem:[%s127_s2] ss:$0 sm:$0xff] }
   0x4   :  { %48 = vmatpush.msra.mxu0 %v24_v1  ;;  %82 = vmatpush.msra.mxu1 %v24_v1 }
   0x5   :  { %79 = vmatmul.msk.f32.vlgmr.msra.gmra.mxu0 %vm26_vm0, %v22_v2  ;;  %80 = vmatmul.msk.f32.vlgmr.msra.gmra.mxu1 %vm26_vm0, %v23_v3 }
  0x82   :  { %v50_v5 = vpop.f32.mrf.mxu0  ;;  %v53_v6 = vpop.f32.mrf.mxu1 }
  0x83   :  { %v69_v7 = vadd.f32 %v83_v4, %v50_v5  ;;  %v70_v8 = vadd.f32 %v83_v4, %v53_v6 }
  0x85   :  { %v71_v9 = vmax.f32 %v69_v7, 0.0  ;;  %v72_v10 = vmax.f32 %v70_v8, 0.0 }
  0x87   :  { %73 = vst [vmem:[%s128_s3] sm:$0xff] %v71_v9 }
  0x88   :  { %74 = vst [vmem:[%s128_s3 + $0x8] sm:$0xff] %v72_v10 }

// kernel: dygcn_forward.11
= control target key start
LH: loop header
LB: loop body
LE: loop exit
PB: predicated region body
PF: predicated region fallthrough
CT: control target
= control target key end

     0   :  { %vm26_vm0 = vcmask 130048   ;;  %s123_s1 = inlined_call_operand.vmem [shape: f32[16,128], index: 1, kind: input, shape index: {}]   ;;  %s124_s0 = inlined_call_operand.vmem [shape: f32[16,16], index: 0, kind: input, shape index: {}]   ;;  %s125_s2 = inlined_call_operand.vmem [shape: f32[1,128], index: 2, kind: input, shape index: {}]   ;;  %s126_s3 = inlined_call_operand.vmem [shape: f32[16,128], index: 3, kind: output, shape index: {}]  }
   0x1   :  { %v25_v0 = vld [vmem:[%s123_s1 + $0x8] sm:$0xff]  ;;  %v24_v1 = vld [vmem:[%s123_s1] sm:$0xff] }
   0x2   :  { %47 = vmatpush.msra.mxu0 %v25_v0  ;;  %79 = vmatpush.msra.mxu1 %v25_v0  ;;  %v22_v2 = vld [vmem:[%s124_s0] sm:$0xff]  ;;  %v23_v3 = vld [vmem:[%s124_s0 + $0x8] sm:$0xff] }
   0x3   :  { %v81_v4 = vld [vmem:[%s125_s2] ss:$0 sm:$0xff] }
   0x4   :  { %48 = vmatpush.msra.mxu0 %v24_v1  ;;  %80 = vmatpush.msra.mxu1 %v24_v1 }
   0x5   :  { %77 = vmatmul.msk.f32.vlgmr.msra.gmra.mxu0 %vm26_vm0, %v22_v2  ;;  %78 = vmatmul.msk.f32.vlgmr.msra.gmra.mxu1 %vm26_vm0, %v23_v3 }
  0x82   :  { %v50_v5 = vpop.f32.mrf.mxu0  ;;  %v53_v6 = vpop.f32.mrf.mxu1 }
  0x83   :  { %v69_v7 = vadd.f32 %v81_v4, %v50_v5  ;;  %v70_v8 = vadd.f32 %v81_v4, %v53_v6 }
  0x85   :  { %71 = vst [vmem:[%s126_s3] sm:$0xff] %v69_v7 }
  0x86   :  { %72 = vst [vmem:[%s126_s3 + $0x8] sm:$0xff] %v70_v8 }

// kernel: dygcn_forward.12
= control target key start
LH: loop header
LB: loop body
LE: loop exit
PB: predicated region body
PF: predicated region fallthrough
CT: control target
= control target key end

     0   :  { %s816_s2 = inlined_call_operand.vmem [shape: f32[128,384], index: 2, kind: input, shape index: {}]   ;;  %s817_s3 = inlined_call_operand.vmem [shape: f32[128,384], index: 3, kind: input, shape index: {}]   ;;  %s818_s1 = inlined_call_operand.vmem [shape: f32[16,128], index: 1, kind: input, shape index: {}, may-alias: {1,6}]   ;;  %s819_s0 = inlined_call_operand.vmem [shape: f32[16,128], index: 0, kind: input, shape index: {}]   ;;  %s820_s4 = inlined_call_operand.vmem [shape: f32[1,384], index: 4, kind: input, shape index: {}]   ;;  %s821_s5 = inlined_call_operand.vmem [shape: f32[1,384], index: 5, kind: input, shape index: {}]   ;;  %s822_s6 = inlined_call_operand.vmem [shape: f32[16,128], index: 6, kind: output, shape index: {}, may-alias: {1,6}]  }
   0x1   :  { %v72_v0 = vld [vmem:[%s816_s2 + $0x168] sm:$0xff]  ;;  %v74_v1 = vld [vmem:[%s816_s2 + $0x178] sm:$0xff]  ;;  %v69_v3 = vld [vmem:[%s816_s2 + $0x150] sm:$0xff] }
   0x2   :  { %v197_v2 = vld [vmem:[%s817_s3 + $0x168] sm:$0xff]  ;;  %83 = vmatpush.msra.mxu0 %v72_v0  ;;  %129 = vmatpush.msra.mxu2 %v74_v1  ;;  %v71_v4 = vld [vmem:[%s816_s2 + $0x160] sm:$0xff]  ;;  %v194_v5 = vld [vmem:[%s817_s3 + $0x150] sm:$0xff] }
   0x3   :  { %208 = vmatpush.msra.mxu3 %v197_v2  ;;  %v66_v6 = vld [vmem:[%s816_s2 + $0x138] sm:$0xff]  ;;  %v68_v7 = vld [vmem:[%s816_s2 + $0x148] sm:$0xff]  ;;  %v73_v9 = vld [vmem:[%s816_s2 + $0x170] sm:$0xff] }
   0x4   :  { %84 = vmatpush.msra.mxu0 %v69_v3  ;;  %130 = vmatpush.msra.mxu2 %v71_v4  ;;  %v191_v8 = vld [vmem:[%s817_s3 + $0x138] sm:$0xff]  ;;  %v63_v10 = vld [vmem:[%s816_s2 + $0x120] sm:$0xff]  ;;  %v65_v11 = vld [vmem:[%s816_s2 + $0x130] sm:$0xff] }
   0x5   :  { %209 = vmatpush.msra.mxu3 %v194_v5  ;;  %106 = vmatpush.msra.mxu1 %v73_v9  ;;  %v70_v12 = vld [vmem:[%s816_s2 + $0x158] sm:$0xff]  ;;  %v188_v13 = vld [vmem:[%s817_s3 + $0x120] sm:$0xff]  ;;  %v60_v15 = vld [vmem:[%s816_s2 + $0x108] sm:$0xff] }
   0x6   :  { %85 = vmatpush.msra.mxu0 %v66_v6  ;;  %131 = vmatpush.msra.mxu2 %v68_v7  ;;  %v67_v14 = vld [vmem:[%s816_s2 + $0x140] sm:$0xff]  ;;  %v62_v16 = vld [vmem:[%s816_s2 + $0x118] sm:$0xff]  ;;  %v185_v17 = vld [vmem:[%s817_s3 + $0x108] sm:$0xff] }
   0x7   :  { %210 = vmatpush.msra.mxu3 %v191_v8  ;;  %107 = vmatpush.msra.mxu1 %v70_v12  ;;  %v64_v18 = vld [vmem:[%s816_s2 + $0x128] sm:$0xff]  ;;  %v57_v19 = vld [vmem:[%s816_s2 + $0xf0] sm:$0xff]  ;;  %v59_v20 = vld [vmem:[%s816_s2 + $0x100] sm:$0xff] }
   0x8   :  { %86 = vmatpush.msra.mxu0 %v63_v10  ;;  %132 = vmatpush.msra.mxu2 %v65_v11  ;;  %v182_v21 = vld [vmem:[%s817_s3 + $0xf0] sm:$0xff]  ;;  %v54_v23 = vld [vmem:[%s816_s2 + $0xd8] sm:$0xff]  ;;  %v56_v24 = vld [vmem:[%s816_s2 + $0xe8] sm:$0xff] }
   0x9   :  { %211 = vmatpush.msra.mxu3 %v188_v13  ;;  %108 = vmatpush.msra.mxu1 %v67_v14  ;;  %v61_v22 = vld [vmem:[%s816_s2 + $0x110] sm:$0xff]  ;;  %v179_v25 = vld [vmem:[%s817_s3 + $0xd8] sm:$0xff]  ;;  %v51_v27 = vld [vmem:[%s816_s2 + $0xc0] sm:$0xff] }
   0xa   :  { %87 = vmatpush.msra.mxu0 %v60_v15  ;;  %133 = vmatpush.msra.mxu2 %v62_v16  ;;  %v58_v26 = vld [vmem:[%s816_s2 + $0xf8] sm:$0xff]  ;;  %v53_v28 = vld [vmem:[%s816_s2 + $0xd0] sm:$0xff]  ;;  %v176_v29 = vld [vmem:[%s817_s3 + $0xc0] sm:$0xff] }
   0xb   :  { %212 = vmatpush.msra.mxu3 %v185_v17  ;;  %109 = vmatpush.msra.mxu1 %v64_v18  ;;  %v55_v30 = vld [vmem:[%s816_s2 + $0xe0] sm:$0xff]  ;;  %v48_v31 = vld [vmem:[%s816_s2 + $0xa8] sm:$0xff]  ;;  %v50_v32 = vld [vmem:[%s816_s2 + $0xb8] sm:$0xff] }
   0xc   :  { %88 = vmatpush.msra.mxu0 %v57_v19  ;;  %134 = vmatpush.msra.mxu2 %v59_v20  ;;  %v173_v33 = vld [vmem:[%s817_s3 + $0xa8] sm:$0xff]  ;;  %v45_v35 = vld [vmem:[%s816_s2 + $0x90] sm:$0xff]  ;;  %v47_v36 = vld [vmem:[%s816_s2 + $0xa0] sm:$0xff] }
   0xd   :  { %213 = vmatpush.msra.mxu3 %v182_v21  ;;  %110 = vmatpush.msra.mxu1 %v61_v22  ;;  %v52_v34 = vld [vmem:[%s816_s2 + $0xc8] sm:$0xff]  ;;  %v170_v37 = vld [vmem:[%s817_s3 + $0x90] sm:$0xff]  ;;  %v42_v39 = vld [vmem:[%s816_s2 + $0x78] sm:$0xff] }
   0xe   :  { %89 = vmatpush.msra.mxu0 %v54_v23  ;;  %135 = vmatpush.msra.mxu2 %v56_v24  ;;  %v49_v38 = vld [vmem:[%s816_s2 + $0xb0] sm:$0xff]  ;;  %v44_v40 = vld [vmem:[%s816_s2 + $0x88] sm:$0xff]  ;;  %v167_v41 = vld [vmem:[%s817_s3 + $0x78] sm:$0xff] }
   0xf   :  { %214 = vmatpush.msra.mxu3 %v179_v25  ;;  %111 = vmatpush.msra.mxu1 %v58_v26  ;;  %v46_v42 = vld [vmem:[%s816_s2 + $0x98] sm:$0xff]  ;;  %v39_v43 = vld [vmem:[%s816_s2 + $0x60] sm:$0xff]  ;;  %v41_v44 = vld [vmem:[%s816_s2 + $0x70] sm:$0xff] }
  0x10   :  { %90 = vmatpush.msra.mxu0 %v51_v27  ;;  %136 = vmatpush.msra.mxu2 %v53_v28  ;;  %v164_v45 = vld [vmem:[%s817_s3 + $0x60] sm:$0xff]  ;;  %v36_v47 = vld [vmem:[%s816_s2 + $0x48] sm:$0xff]  ;;  %v38_v48 = vld [vmem:[%s816_s2 + $0x58] sm:$0xff] }
  0x11   :  { %215 = vmatpush.msra.mxu3 %v176_v29  ;;  %112 = vmatpush.msra.mxu1 %v55_v30  ;;  %v43_v46 = vld [vmem:[%s816_s2 + $0x80] sm:$0xff]  ;;  %v161_v49 = vld [vmem:[%s817_s3 + $0x48] sm:$0xff]  ;;  %v33_v51 = vld [vmem:[%s816_s2 + $0x30] sm:$0xff] }
  0x12   :  { %91 = vmatpush.msra.mxu0 %v48_v31  ;;  %137 = vmatpush.msra.mxu2 %v50_v32  ;;  %v40_v50 = vld [vmem:[%s816_s2 + $0x68] sm:$0xff]  ;;  %v35_v52 = vld [vmem:[%s816_s2 + $0x40] sm:$0xff]  ;;  %v158_v53 = vld [vmem:[%s817_s3 + $0x30] sm:$0xff] }
  0x13   :  { %216 = vmatpush.msra.mxu3 %v173_v33  ;;  %113 = vmatpush.msra.mxu1 %v52_v34  ;;  %v37_v54 = vld [vmem:[%s816_s2 + $0x50] sm:$0xff]  ;;  %v30_v55 = vld [vmem:[%s816_s2 + $0x18] sm:$0xff]  ;;  %v32_v56 = vld [vmem:[%s816_s2 + $0x28] sm:$0xff] }
  0x14   :  { %92 = vmatpush.msra.mxu0 %v45_v35  ;;  %138 = vmatpush.msra.mxu2 %v47_v36  ;;  %v155_v57 = vld [vmem:[%s817_s3 + $0x18] sm:$0xff]  ;;  %v27_v59 = vld [vmem:[%s816_s2] sm:$0xff]  ;;  %v29_v60 = vld [vmem:[%s816_s2 + $0x10] sm:$0xff] }
  0x15   :  { %217 = vmatpush.msra.mxu3 %v170_v37  ;;  %114 = vmatpush.msra.mxu1 %v49_v38  ;;  %v34_v58 = vld [vmem:[%s816_s2 + $0x38] sm:$0xff]  ;;  %v152_v61 = vld [vmem:[%s817_s3] sm:$0xff]  ;;  %v198_v62 = vld [vmem:[%s817_s3 + $0x170] sm:$0xff] }
  0x16   :  { %93 = vmatpush.msra.mxu0 %v42_v39  ;;  %139 = vmatpush.msra.mxu2 %v44_v40  ;;  %v660_v63 = vld [vmem:[%s818_s1] sm:$0xff]  ;;  %v195_v1 = vld [vmem:[%s817_s3 + $0x158] sm:$0xff]  ;;  %v28_v3 = vld [vmem:[%s816_s2 + $0x8] sm:$0xff] }
  0x17   :  { %218 = vmatpush.msra.mxu3 %v167_v41  ;;  %115 = vmatpush.msra.mxu1 %v46_v42  ;;  %v31_v0 = vld [vmem:[%s816_s2 + $0x20] sm:$0xff]  ;;  %v199_v5 = vld [vmem:[%s817_s3 + $0x178] sm:$0xff]  ;;  %v189_v6 = vld [vmem:[%s817_s3 + $0x128] sm:$0xff] }
  0x18   :  { %94 = vmatpush.msra.mxu0 %v39_v43  ;;  %140 = vmatpush.msra.mxu2 %v41_v44  ;;  %v671_v2 = vld [vmem:[%s819_s0] sm:$0xff]  ;;  %v186_v8 = vld [vmem:[%s817_s3 + $0x110] sm:$0xff]  ;;  %v696_v9 = vld [vmem:[%s818_s1 + $0x8] sm:$0xff] }
  0x19   :  { %219 = vmatpush.msra.mxu3 %v164_v45  ;;  %116 = vmatpush.msra.mxu1 %v43_v46  ;;  %v192_v4 = vld [vmem:[%s817_s3 + $0x140] sm:$0xff]  ;;  %v193_v10 = vld [vmem:[%s817_s3 + $0x148] sm:$0xff]  ;;  %v183_v11 = vld [vmem:[%s817_s3 + $0xf8] sm:$0xff] }
  0x1a   :  { %95 = vmatpush.msra.mxu0 %v36_v47  ;;  %141 = vmatpush.msra.mxu2 %v38_v48  ;;  %v196_v7 = vld [vmem:[%s817_s3 + $0x160] sm:$0xff]  ;;  %v190_v12 = vld [vmem:[%s817_s3 + $0x130] sm:$0xff]  ;;  %v187_v14 = vld [vmem:[%s817_s3 + $0x118] sm:$0xff] }
  0x1b   :  { %220 = vmatpush.msra.mxu3 %v161_v49  ;;  %117 = vmatpush.msra.mxu1 %v40_v50  ;;  %v180_v13 = vld [vmem:[%s817_s3 + $0xe0] sm:$0xff]  ;;  %v24_v15 = vld [vmem:[%s819_s0 + $0x8] sm:$0xff]  ;;  %v174_v18 = vld [vmem:[%s817_s3 + $0xb0] sm:$0xff] }
  0x1c   :  { %96 = vmatpush.msra.mxu0 %v33_v51  ;;  %142 = vmatpush.msra.mxu2 %v35_v52  ;;  %v177_v16 = vld [vmem:[%s817_s3 + $0xc8] sm:$0xff]  ;;  %v184_v17 = vld [vmem:[%s817_s3 + $0x100] sm:$0xff]  ;;  %v171_v20 = vld [vmem:[%s817_s3 + $0x98] sm:$0xff] }
  0x1d   :  { %221 = vmatpush.msra.mxu3 %v158_v53  ;;  %118 = vmatpush.msra.mxu1 %v37_v54  ;;  %v181_v19 = vld [vmem:[%s817_s3 + $0xe8] sm:$0xff]  ;;  %v178_v21 = vld [vmem:[%s817_s3 + $0xd0] sm:$0xff]  ;;  %v168_v22 = vld [vmem:[%s817_s3 + $0x80] sm:$0xff] }
  0x1e   :  { %97 = vmatpush.msra.mxu0 %v30_v55  ;;  %143 = vmatpush.msra.mxu2 %v32_v56  ;;  %v175_v23 = vld [vmem:[%s817_s3 + $0xb8] sm:$0xff]  ;;  %v165_v24 = vld [vmem:[%s817_s3 + $0x68] sm:$0xff]  ;;  %v172_v25 = vld [vmem:[%s817_s3 + $0xa0] sm:$0xff] }
  0x1f   :  { %222 = vmatpush.msra.mxu3 %v155_v57  ;;  %119 = vmatpush.msra.mxu1 %v34_v58  ;;  %v162_v26 = vld [vmem:[%s817_s3 + $0x50] sm:$0xff]  ;;  %v169_v27 = vld [vmem:[%s817_s3 + $0x88] sm:$0xff]  ;;  %v159_v28 = vld [vmem:[%s817_s3 + $0x38] sm:$0xff] }
  0x20   :  { %98 = vmatpush.msra.mxu0 %v27_v59  ;;  %144 = vmatpush.msra.mxu2 %v29_v60  ;;  %v166_v29 = vld [vmem:[%s817_s3 + $0x70] sm:$0xff]  ;;  %v156_v30 = vld [vmem:[%s817_s3 + $0x20] sm:$0xff]  ;;  %v163_v31 = vld [vmem:[%s817_s3 + $0x58] sm:$0xff] }
  0x21   :  { %223 = vmatpush.msra.mxu3 %v152_v61  ;;  %120 = vmatpush.msra.mxu1 %v31_v0  ;;  %v153_v32 = vld [vmem:[%s817_s3 + $0x8] sm:$0xff]  ;;  %v160_v33 = vld [vmem:[%s817_s3 + $0x40] sm:$0xff]  ;;  %v154_v35 = vld [vmem:[%s817_s3 + $0x10] sm:$0xff] }
  0x22   :  { %231 = vmatpush.msrb.mxu0 %v198_v62  ;;  %224 = vmatmul.f32.vlgmr.msra.gmra.mxu3 %v660_v63  ;;  %v157_v34 = vld [vmem:[%s817_s3 + $0x28] sm:$0xff]  ;;  %v786_v36 = vld [vmem:[%s820_s4] sm:$0x7] }
  0x23   :  { %381 = vmatpush.msrb.mxu2 %v198_v62  ;;  %99 = vmatmul.f32.vlgmr.msra.gmra.mxu0 %v671_v2  ;;  %v791_v37 = vld [vmem:[%s821_s5] sm:$0x7]  ;;  %v77_v38 = vperm.slane %v786_v36, 0  ;;  %v78_v59 = vperm.slane %v786_v36, 1 }
  0x24   :  { %232 = vmatpush.msrb.mxu0 %v195_v1  ;;  %121 = vmatpush.msra.mxu1 %v28_v3  ;;  %v202_v40 = vperm.slane %v791_v37, 0  ;;  %v203_v61 = vperm.slane %v791_v37, 1 }
  0x25   :  { %382 = vmatpush.msrb.mxu2 %v195_v1  ;;  %397 = vmatpush.msrb.mxu3 %v199_v5 }
  0x26   :  { %233 = vmatpush.msrb.mxu0 %v192_v4  ;;  %254 = vmatpush.msrb.mxu1 %v199_v5 }
  0x27   :  { %383 = vmatpush.msrb.mxu2 %v192_v4  ;;  %398 = vmatpush.msrb.mxu3 %v196_v7 }
  0x28   :  { %234 = vmatpush.msrb.mxu0 %v189_v6  ;;  %255 = vmatpush.msrb.mxu1 %v196_v7 }
  0x29   :  { %384 = vmatpush.msrb.mxu2 %v189_v6  ;;  %399 = vmatpush.msrb.mxu3 %v193_v10 }
  0x2a   :  { %235 = vmatpush.msrb.mxu0 %v186_v8  ;;  %227 = vmatmul.f32.gmra.mxu3 %v696_v9 }
  0x2b   :  { %385 = vmatpush.msrb.mxu2 %v186_v8  ;;  %256 = vmatpush.msrb.mxu1 %v193_v10 }
  0x2c   :  { %236 = vmatpush.msrb.mxu0 %v183_v11  ;;  %400 = vmatpush.msrb.mxu3 %v190_v12 }
  0x2d   :  { %386 = vmatpush.msrb.mxu2 %v183_v11  ;;  %257 = vmatpush.msrb.mxu1 %v190_v12 }
  0x2e   :  { %237 = vmatpush.msrb.mxu0 %v180_v13  ;;  %145 = vmatmul.f32.vlgmr.msra.gmra.mxu2 %v671_v2 }
  0x2f   :  { %387 = vmatpush.msrb.mxu2 %v180_v13  ;;  %258 = vmatpush.msrb.mxu1 %v187_v14 }
  0x30   :  { %102 = vmatmul.f32.gmra.mxu0 %v24_v15  ;;  %401 = vmatpush.msrb.mxu3 %v187_v14 }
  0x31   :  { %238 = vmatpush.msrb.mxu0 %v177_v16  ;;  %388 = vmatpush.msrb.mxu2 %v177_v16 }
  0x32   :  { %259 = vmatpush.msrb.mxu1 %v184_v17  ;;  %402 = vmatpush.msrb.mxu3 %v184_v17 }
  0x33   :  { %239 = vmatpush.msrb.mxu0 %v174_v18  ;;  %389 = vmatpush.msrb.mxu2 %v174_v18 }
  0x34   :  { %260 = vmatpush.msrb.mxu1 %v181_v19  ;;  %403 = vmatpush.msrb.mxu3 %v181_v19 }
  0x35   :  { %240 = vmatpush.msrb.mxu0 %v171_v20  ;;  %390 = vmatpush.msrb.mxu2 %v171_v20 }
  0x36   :  { %261 = vmatpush.msrb.mxu1 %v178_v21  ;;  %404 = vmatpush.msrb.mxu3 %v178_v21  ;;  %v204_v21 = vperm.slane %v791_v37, 2 }
  0x37   :  { %241 = vmatpush.msrb.mxu0 %v168_v22  ;;  %122 = vmatmul.f32.vlgmr.msra.gmra.mxu1 %v671_v2 }
  0x38   :  { %391 = vmatpush.msrb.mxu2 %v168_v22  ;;  %262 = vmatpush.msrb.mxu1 %v175_v23 }
  0x39   :  { %242 = vmatpush.msrb.mxu0 %v165_v24  ;;  %148 = vmatmul.f32.gmra.mxu2 %v24_v15 }
  0x3a   :  { %392 = vmatpush.msrb.mxu2 %v165_v24  ;;  %405 = vmatpush.msrb.mxu3 %v175_v23 }
  0x3b   :  { %263 = vmatpush.msrb.mxu1 %v172_v25  ;;  %243 = vmatpush.msrb.mxu0 %v162_v26 }
  0x3c   :  { %393 = vmatpush.msrb.mxu2 %v162_v26  ;;  %406 = vmatpush.msrb.mxu3 %v172_v25 }
  0x3d   :  { %264 = vmatpush.msrb.mxu1 %v169_v27  ;;  %244 = vmatpush.msrb.mxu0 %v159_v28 }
  0x3e   :  { %394 = vmatpush.msrb.mxu2 %v159_v28  ;;  %407 = vmatpush.msrb.mxu3 %v169_v27 }
  0x3f   :  { %265 = vmatpush.msrb.mxu1 %v166_v29  ;;  %245 = vmatpush.msrb.mxu0 %v156_v30 }
  0x40   :  { %125 = vmatmul.f32.gmra.mxu1 %v24_v15  ;;  %395 = vmatpush.msrb.mxu2 %v156_v30 }
  0x41   :  { %408 = vmatpush.msrb.mxu3 %v166_v29  ;;  %266 = vmatpush.msrb.mxu1 %v163_v31 }
  0x42   :  { %246 = vmatpush.msrb.mxu0 %v153_v32  ;;  %396 = vmatpush.msrb.mxu2 %v153_v32 }
  0x43   :  { %247 = vmatmul.f32.vlgmr.msrb.gmra.mxu0 %v660_v63  ;;  %250 = vmatmul.f32.vlgmr.msrb.gmra.mxu2 %v696_v9 }
  0x44   :  { %409 = vmatpush.msrb.mxu3 %v163_v31  ;;  %267 = vmatpush.msrb.mxu1 %v160_v33 }
  0x46   :  { %410 = vmatpush.msrb.mxu3 %v160_v33  ;;  %268 = vmatpush.msrb.mxu1 %v157_v34  ;;  %v79_v33 = vperm.slane %v786_v36, 2 }
  0x48   :  { %411 = vmatpush.msrb.mxu3 %v157_v34  ;;  %269 = vmatpush.msrb.mxu1 %v154_v35 }
  0x49   :  { %270 = vmatmul.f32.vlgmr.msrb.gmra.mxu1 %v660_v63 }
  0x4a   :  { %412 = vmatpush.msrb.mxu3 %v154_v35 }
  0x4b   :  { %273 = vmatmul.f32.vlgmr.msrb.gmra.mxu3 %v696_v9 }
  0xa0   :  { %v100_v39 = vpop.f32.mrf.mxu0 }
  0xa1   :  { %v101_v41 = vadd.f32 %v100_v39, %v77_v38 }
  0xa5   :  { %v225_v42 = vpop.f32.mrf.mxu3 }
  0xa6   :  { %v226_v43 = vadd.f32 %v225_v42, %v202_v40 }
  0xa8   :  { %v277_v44 = vadd.f32 %v226_v43, %v101_v41 }
  0xaa   :  { %v377_v45 = vmul.f32 -1.442695, %v277_v44 }
  0xac   :  { %413 = vpow2.f32 %v377_v45 }
  0xad   :  { %v103_v46 = vpop.f32.mrf.mxu0  ;;  %v228_v48 = vpop.f32.mrf.mxu3 }
  0xae   :  { %v104_v47 = vadd.f32 %v103_v46, %v77_v38  ;;  %v229_v49 = vadd.f32 %v228_v48, %v202_v40 }
  0xb0   :  { %v278_v50 = vadd.f32 %v229_v49, %v104_v47 }
  0xb1   :  { %v146_v54 = vpop.f32.mrf.mxu2 }
  0xb2   :  { %v414_v51 = vpop.eup %413  ;;  %v378_v52 = vmul.f32 -1.442695, %v278_v50  ;;  %v147_v42 = vadd.f32 %v146_v54, %v79_v33 }
  0xb3   :  { %v285_v53 = vadd.f32 1.0, %v414_v51 }
  0xb4   :  { %415 = vpow2.f32 %v378_v52  ;;  %v123_v55 = vpop.f32.mrf.mxu1 }
  0xb5   :  { %417 = vrcp.f32 %v285_v53  ;;  %v124_v1 = vadd.f32 %v123_v55, %v78_v59  ;;  %vm292_vm0 = vweird.f32 %v285_v53  ;;  %v298_v14 = vand.u32 2147483648, %v285_v53 }
  0xb6   :  { %v296_v18 = vand.u32 2147483647, %v285_v53 }
  0xb7   :  { %v299_v24 = vor.u32 1.1754944e-38, %v298_v14 }
  0xb8   :  { %vm297_vm3 = vcmp.eq.f32.partialorder %v296_v18, 8.507059e+37 }
  0xba   :  { %v416_v56 = vpop.eup %415 }
  0xbb   :  { %v418_v57 = vpop.eup %417  ;;  %v286_v58 = vadd.f32 1.0, %v416_v56 }
  0xbc   :  { %v796_v60 = vpop.f32.mrf.mxu2  ;;  %v288_v62 = vmul.f32 %v418_v57, %v285_v53  ;;  %vm293_vm1 = vweird.f32 %v418_v57 }
  0xbd   :  { %419 = vrcp.f32 %v286_v58  ;;  %v126_v5 = vpop.f32.mrf.mxu1  ;;  %vm799_vm2 = vmor %vm292_vm0, %vm293_vm1  ;;  %vm307_vm4 = vweird.f32 %v286_v58  ;;  %v313_v29 = vand.u32 2147483648, %v286_v58  ;;  %v311_v32 = vand.u32 2147483647, %v286_v58 }
  0xbe   :  { %v289_v3 = vsub.f32 1.0, %v288_v62  ;;  %v127_v7 = vadd.f32 %v126_v5, %v78_v59  ;;  %v150_v52 = vadd.f32 %v796_v60, %v79_v33 }
  0xbf   :  { %v314_v38 = vor.u32 1.1754944e-38, %v313_v29  ;;  %vm312_vm7 = vcmp.eq.f32.partialorder %v311_v32, 8.507059e+37 }
  0xc0   :  { %v248_v0 = vpop.f32.mrf.mxu0  ;;  %v290_v11 = vmul.f32 %v418_v57, %v289_v3 }
  0xc1   :  { %v249_v2 = vadd.f32 %v248_v0, %v203_v61 }
  0xc2   :  { %v291_v17 = vadd.f32 %v418_v57, %v290_v11 }
  0xc3   :  { %v420_v4 = vpop.eup %419  ;;  %v317_v6 = vadd.f32 %v249_v2, %v124_v1 }
  0xc4   :  { %v303_v10 = vmul.f32 %v420_v4, %v286_v58  ;;  %v295_v27 = vsel %vm799_vm2, %v418_v57, %v291_v17  ;;  %vm308_vm5 = vweird.f32 %v420_v4 }
  0xc5   :  { %v379_v8 = vmul.f32 -1.442695, %v317_v6  ;;  %v300_v30 = vsel %vm297_vm3, %v299_v24, %v295_v27  ;;  %vm309_vm6 = vmor %vm307_vm4, %vm308_vm5 }
  0xc6   :  { %v251_v12 = vpop.f32.mrf.mxu2  ;;  %v304_v16 = vsub.f32 1.0, %v303_v10  ;;  %v271_v23 = vpop.f32.mrf.mxu1 }
  0xc7   :  { %421 = vpow2.f32 %v379_v8  ;;  %v252_v13 = vadd.f32 %v251_v12, %v203_v61  ;;  %v272_v28 = vadd.f32 %v271_v23, %v204_v21 }
  0xc8   :  { %v305_v25 = vmul.f32 %v420_v4, %v304_v16 }
  0xc9   :  { %v318_v15 = vadd.f32 %v252_v13, %v127_v7  ;;  %v357_v35 = vmul.f32 %v300_v30, %v272_v28 }
  0xca   :  { %v306_v31 = vadd.f32 %v420_v4, %v305_v25 }
  0xcb   :  { %v380_v20 = vmul.f32 -1.442695, %v318_v15  ;;  %v359_v45 = vadd.f32 %v357_v35, %v147_v42 }
  0xcc   :  { %v310_v40 = vsel %vm309_vm6, %v420_v4, %v306_v31 }
  0xcd   :  { %v422_v22 = vpop.eup %421  ;;  %423 = vpow2.f32 %v380_v20  ;;  %v315_v46 = vsel %vm312_vm7, %v314_v38, %v310_v40 }
  0xce   :  { %v325_v26 = vadd.f32 1.0, %v422_v22  ;;  %v274_v37 = vpop.f32.mrf.mxu3 }
  0xcf   :  { %v275_v44 = vadd.f32 %v274_v37, %v204_v21 }
  0xd0   :  { %425 = vrcp.f32 %v325_v26  ;;  %v338_v48 = vand.u32 2147483648, %v325_v26  ;;  %v336_v36 = vand.u32 2147483647, %v325_v26  ;;  %vm332_vm9 = vweird.f32 %v325_v26 }
  0xd1   :  { %v358_v50 = vmul.f32 %v315_v46, %v275_v44 }
  0xd2   :  { %v339_v55 = vor.u32 1.1754944e-38, %v338_v48  ;;  %vm337_vm11 = vcmp.eq.f32.partialorder %v336_v36, 8.507059e+37 }
  0xd3   :  { %v424_v34 = vpop.eup %423  ;;  %v360_v57 = vadd.f32 %v358_v50, %v150_v52 }
  0xd4   :  { %v326_v39 = vadd.f32 1.0, %v424_v34 }
  0xd6   :  { %v426_v41 = vpop.eup %425  ;;  %427 = vrcp.f32 %v326_v39  ;;  %v353_v62 = vand.u32 2147483648, %v326_v39  ;;  %v351_v2 = vand.u32 2147483647, %v326_v39  ;;  %vm347_vm13 = vweird.f32 %v326_v39 }
  0xd7   :  { %v328_v43 = vmul.f32 %v426_v41, %v325_v26  ;;  %vm333_vm8 = vweird.f32 %v426_v41  ;;  %429 = vtanh.f32 %v359_v45 }
  0xd8   :  { %vm334_vm10 = vmor %vm332_vm9, %vm333_vm8  ;;  %431 = vtanh.f32 %v360_v57  ;;  %v354_v6 = vor.u32 1.1754944e-38, %v353_v62  ;;  %vm352_vm15 = vcmp.eq.f32.partialorder %v351_v2, 8.507059e+37 }
  0xd9   :  { %v329_v47 = vsub.f32 1.0, %v328_v43 }
  0xdb   :  { %v330_v49 = vmul.f32 %v426_v41, %v329_v47 }
  0xdc   :  { %v428_v51 = vpop.eup %427 }
  0xdd   :  { %v331_v53 = vadd.f32 %v426_v41, %v330_v49  ;;  %v343_v54 = vmul.f32 %v428_v51, %v326_v39  ;;  %v430_v0 = vpop.eup %429  ;;  %vm348_vm12 = vweird.f32 %v428_v51 }
  0xde   :  { %vm349_vm14 = vmor %vm347_vm13, %vm348_vm12  ;;  %v432_v11 = vpop.eup %431 }
  0xdf   :  { %v335_v56 = vsel %vm334_vm10, %v426_v41, %v331_v53  ;;  %v344_v59 = vsub.f32 1.0, %v343_v54 }
  0xe0   :  { %v340_v58 = vsel %vm337_vm11, %v339_v55, %v335_v56 }
  0xe1   :  { %v363_v61 = vsub.f32 1.0, %v340_v58  ;;  %v345_v1 = vmul.f32 %v428_v51, %v344_v59  ;;  %v367_v4 = vmul.f32 %v340_v58, %v660_v63 }
  0xe3   :  { %v365_v3 = vmul.f32 %v430_v0, %v363_v61  ;;  %v346_v60 = vadd.f32 %v428_v51, %v345_v1 }
  0xe5   :  { %v369_v5 = vadd.f32 %v367_v4, %v365_v3  ;;  %v350_v7 = vsel %vm349_vm14, %v428_v51, %v346_v60 }
  0xe6   :  { %v355_v8 = vsel %vm352_vm15, %v354_v6, %v350_v7 }
  0xe7   :  { %371 = vst [vmem:[%s822_s6] sm:$0xff] %v369_v5  ;;  %v364_v10 = vsub.f32 1.0, %v355_v8  ;;  %v368_v13 = vmul.f32 %v355_v8, %v696_v9 }
  0xe9   :  { %v366_v12 = vmul.f32 %v432_v11, %v364_v10 }
  0xeb   :  { %v370_v14 = vadd.f32 %v368_v13, %v366_v12 }
  0xed   :  { %372 = vst [vmem:[%s822_s6 + $0x8] sm:$0xff] %v370_v14 }

// kernel: dygcn_forward.13
= control target key start
LH: loop header
LB: loop body
LE: loop exit
PB: predicated region body
PF: predicated region fallthrough
CT: control target
= control target key end

     0   :  { %s335_s1 = inlined_call_operand.vmem [shape: f32[256,128], index: 1, kind: input, shape index: {}]   ;;  %s336_s3 = inlined_call_operand.vmem [shape: f32[128,128], index: 3, kind: input, shape index: {}]   ;;  %s337_s2 = inlined_call_operand.vmem [shape: f32[1,128], index: 2, kind: input, shape index: {}]   ;;  %s338_s0 = inlined_call_operand.vmem [shape: f32[8,256], index: 0, kind: input, shape index: {}]   ;;  %s339_s4 = inlined_call_operand.vmem [shape: f32[1,128], index: 4, kind: input, shape index: {}]   ;;  %s340_s5 = inlined_call_operand.vmem [shape: f32[8,128], index: 5, kind: output, shape index: {}]  }
   0x1   :  { %v37_v0 = vld [vmem:[%s335_s1 + $0x78] sm:$0xff]  ;;  %v36_v1 = vld [vmem:[%s335_s1 + $0x70] sm:$0xff]  ;;  %v35_v4 = vld [vmem:[%s335_s1 + $0x68] sm:$0xff] }
   0x2   :  { %v53_v2 = vld [vmem:[%s335_s1 + $0xf8] sm:$0xff]  ;;  %58 = vmatpush.msra.mxu0 %v37_v0  ;;  %v52_v3 = vld [vmem:[%s335_s1 + $0xf0] sm:$0xff]  ;;  %v51_v5 = vld [vmem:[%s335_s1 + $0xe8] sm:$0xff] }
   0x3   :  { %78 = vmatpush.msra.mxu1 %v53_v2  ;;  %v34_v6 = vld [vmem:[%s335_s1 + $0x60] sm:$0xff]  ;;  %v33_v8 = vld [vmem:[%s335_s1 + $0x58] sm:$0xff]  ;;  %v32_v10 = vld [vmem:[%s335_s1 + $0x50] sm:$0xff] }
   0x4   :  { %59 = vmatpush.msra.mxu0 %v36_v1  ;;  %v50_v7 = vld [vmem:[%s335_s1 + $0xe0] sm:$0xff]  ;;  %v49_v9 = vld [vmem:[%s335_s1 + $0xd8] sm:$0xff]  ;;  %v48_v11 = vld [vmem:[%s335_s1 + $0xd0] sm:$0xff] }
   0x5   :  { %79 = vmatpush.msra.mxu1 %v52_v3  ;;  %v31_v12 = vld [vmem:[%s335_s1 + $0x48] sm:$0xff]  ;;  %v114_v14 = vld [vmem:[%s336_s3 + $0x78] sm:$0xff]  ;;  %v113_v15 = vld [vmem:[%s336_s3 + $0x70] sm:$0xff] }
   0x6   :  { %60 = vmatpush.msra.mxu0 %v35_v4  ;;  %v47_v13 = vld [vmem:[%s335_s1 + $0xc8] sm:$0xff]  ;;  %v30_v16 = vld [vmem:[%s335_s1 + $0x40] sm:$0xff]  ;;  %119 = vmatpush.msra.mxu2 %v114_v14  ;;  %v29_v19 = vld [vmem:[%s335_s1 + $0x38] sm:$0xff] }
   0x7   :  { %80 = vmatpush.msra.mxu1 %v51_v5  ;;  %v46_v17 = vld [vmem:[%s335_s1 + $0xc0] sm:$0xff]  ;;  %v112_v18 = vld [vmem:[%s336_s3 + $0x68] sm:$0xff]  ;;  %v45_v20 = vld [vmem:[%s335_s1 + $0xb8] sm:$0xff] }
   0x8   :  { %61 = vmatpush.msra.mxu0 %v34_v6  ;;  %120 = vmatpush.msra.mxu2 %v113_v15  ;;  %v111_v21 = vld [vmem:[%s336_s3 + $0x60] sm:$0xff]  ;;  %v28_v22 = vld [vmem:[%s335_s1 + $0x30] sm:$0xff]  ;;  %v110_v24 = vld [vmem:[%s336_s3 + $0x58] sm:$0xff] }
   0x9   :  { %81 = vmatpush.msra.mxu1 %v50_v7  ;;  %v44_v23 = vld [vmem:[%s335_s1 + $0xb0] sm:$0xff]  ;;  %v27_v25 = vld [vmem:[%s335_s1 + $0x28] sm:$0xff]  ;;  %v26_v28 = vld [vmem:[%s335_s1 + $0x20] sm:$0xff] }
   0xa   :  { %62 = vmatpush.msra.mxu0 %v33_v8  ;;  %121 = vmatpush.msra.mxu2 %v112_v18  ;;  %v43_v26 = vld [vmem:[%s335_s1 + $0xa8] sm:$0xff]  ;;  %v109_v27 = vld [vmem:[%s336_s3 + $0x50] sm:$0xff]  ;;  %v42_v29 = vld [vmem:[%s335_s1 + $0xa0] sm:$0xff] }
   0xb   :  { %82 = vmatpush.msra.mxu1 %v49_v9  ;;  %v108_v30 = vld [vmem:[%s336_s3 + $0x48] sm:$0xff]  ;;  %v25_v31 = vld [vmem:[%s335_s1 + $0x18] sm:$0xff]  ;;  %v107_v33 = vld [vmem:[%s336_s3 + $0x40] sm:$0xff] }
   0xc   :  { %63 = vmatpush.msra.mxu0 %v32_v10  ;;  %122 = vmatpush.msra.mxu2 %v111_v21  ;;  %v41_v32 = vld [vmem:[%s335_s1 + $0x98] sm:$0xff]  ;;  %v24_v34 = vld [vmem:[%s335_s1 + $0x10] sm:$0xff]  ;;  %v23_v37 = vld [vmem:[%s335_s1 + $0x8] sm:$0xff] }
   0xd   :  { %83 = vmatpush.msra.mxu1 %v48_v11  ;;  %v40_v35 = vld [vmem:[%s335_s1 + $0x90] sm:$0xff]  ;;  %v106_v36 = vld [vmem:[%s336_s3 + $0x38] sm:$0xff]  ;;  %v39_v38 = vld [vmem:[%s335_s1 + $0x88] sm:$0xff] }
   0xe   :  { %64 = vmatpush.msra.mxu0 %v31_v12  ;;  %123 = vmatpush.msra.mxu2 %v110_v24  ;;  %v105_v39 = vld [vmem:[%s336_s3 + $0x30] sm:$0xff]  ;;  %v22_v40 = vld [vmem:[%s335_s1] sm:$0xff]  ;;  %v21_v43 = vld [vmem:[%s338_s0 + $0x8] sm:$0xff] }
   0xf   :  { %84 = vmatpush.msra.mxu1 %v47_v13  ;;  %v38_v41 = vld [vmem:[%s335_s1 + $0x80] sm:$0xff]  ;;  %v104_v44 = vld [vmem:[%s336_s3 + $0x28] sm:$0xff]  ;;  %v102_v46 = vld [vmem:[%s336_s3 + $0x18] sm:$0xff] }
  0x10   :  { %65 = vmatpush.msra.mxu0 %v30_v16  ;;  %124 = vmatpush.msra.mxu2 %v109_v27  ;;  %v20_v42 = vld [vmem:[%s338_s0] sm:$0xff]  ;;  %v101_v47 = vld [vmem:[%s336_s3 + $0x10] sm:$0xff]  ;;  %v100_v48 = vld [vmem:[%s336_s3 + $0x8] sm:$0xff] }
  0x11   :  { %85 = vmatpush.msra.mxu1 %v46_v17  ;;  %v103_v45 = vld [vmem:[%s336_s3 + $0x20] sm:$0xff] }
  0x12   :  { %66 = vmatpush.msra.mxu0 %v29_v19  ;;  %125 = vmatpush.msra.mxu2 %v108_v30  ;;  %v99_v49 = vld [vmem:[%s336_s3] sm:$0xff] }
  0x13   :  { %86 = vmatpush.msra.mxu1 %v45_v20  ;;  %v144_v50 = vld [vmem:[%s337_s2] ss:$0 sm:$0xff] }
  0x14   :  { %67 = vmatpush.msra.mxu0 %v28_v22  ;;  %126 = vmatpush.msra.mxu2 %v107_v33  ;;  %v145_v56 = vld [vmem:[%s339_s4] ss:$0 sm:$0xff] }
  0x15   :  { %87 = vmatpush.msra.mxu1 %v44_v23 }
  0x16   :  { %68 = vmatpush.msra.mxu0 %v27_v25  ;;  %127 = vmatpush.msra.mxu2 %v106_v36 }
  0x17   :  { %88 = vmatpush.msra.mxu1 %v43_v26 }
  0x18   :  { %69 = vmatpush.msra.mxu0 %v26_v28  ;;  %128 = vmatpush.msra.mxu2 %v105_v39 }
  0x19   :  { %89 = vmatpush.msra.mxu1 %v42_v29 }
  0x1a   :  { %70 = vmatpush.msra.mxu0 %v25_v31  ;;  %129 = vmatpush.msra.mxu2 %v104_v44 }
  0x1b   :  { %90 = vmatpush.msra.mxu1 %v41_v32 }
  0x1c   :  { %71 = vmatpush.msra.mxu0 %v24_v34  ;;  %130 = vmatpush.msra.mxu2 %v103_v45 }
  0x1d   :  { %91 = vmatpush.msra.mxu1 %v40_v35 }
  0x1e   :  { %72 = vmatpush.msra.mxu0 %v23_v37  ;;  %131 = vmatpush.msra.mxu2 %v102_v46 }
  0x1f   :  { %92 = vmatpush.msra.mxu1 %v39_v38 }
  0x20   :  { %73 = vmatpush.msra.mxu0 %v22_v40  ;;  %132 = vmatpush.msra.mxu2 %v101_v47 }
  0x21   :  { %93 = vmatpush.msra.mxu1 %v38_v41  ;;  %74 = vmatmul.f32.vlgmr.msra.gmra.mxu0 %v20_v42 }
  0x22   :  { %94 = vmatmul.f32.vlgmr.msra.gmra.mxu1 %v21_v43  ;;  %133 = vmatpush.msra.mxu2 %v100_v48 }
  0x24   :  { %134 = vmatpush.msra.mxu2 %v99_v49 }
  0x9e   :  { %v75_v51 = vpop.f32.mrf.mxu0 }
  0x9f   :  { %v95_v52 = vpop.f32.mrf.mxu1  ;;  %v76_v53 = vadd.f32 %v144_v50, %v75_v51 }
  0xa1   :  { %v96_v54 = vadd.f32 %v95_v52, %v76_v53 }
  0xa3   :  { %v98_v55 = vmax.f32 %v96_v54, 0.0 }
  0xa5   :  { %135 = vmatmul.f32.vlgmr.msra.gmra.mxu2 %v98_v55 }
 0x128   :  { %v136_v57 = vpop.f32.mrf.mxu2 }
 0x129   :  { %v137_v58 = vadd.f32 %v145_v56, %v136_v57 }
 0x12b   :  { %139 = vst [vmem:[%s340_s5] sm:$0xff] %v137_v58 }

</bundles_post_ra>
